<compile_context>
chip_gen: v7x
topology: tpu7x:2x2x1
jax: 0.10.0
libtpu: 0.0.40
codegen_flags: <defaults>
</compile_context>

<pallas_src>
import numpy as np
import jax
import jax.numpy as jnp
from jax.experimental import pallas as pl
from jax.experimental.pallas import tpu as pltpu

# Synthetic categorical cardinalities -> emb dims via the module's rule:
#   emb = min(ceil(n_unique / 2), 24), table rows = n_unique + 2
EMB_SIZE = [(10, 5), (20, 10), (30, 15), (40, 20), (50, 24)]  # (n_unique, emb_dim)
N_EMB = sum(e for _, e in EMB_SIZE)            # 74
D_CAT = 384                                    # nn.Linear(n_emb, 384)
D_NUM = 128                                    # nn.Linear(1, 128)
D_BERT_H = 768                                 # BERT pooled hidden size
D_BERT_OUT = 512                               # nn.Linear(768, 512)
D_ALL = D_BERT_OUT + D_NUM + D_CAT             # 1024
D_FC1 = 512
D_FC2 = 256

D_IN = 896                                     # 768 + 74 + 1 + 53 zero-pad = 7*128
D_OUT_PAD = 128                                # fc3 output padded 1 -> 128 lanes


def _head_kernel(x_ref, w1_ref, b1_ref, w2_ref, b2_ref, w3_ref, b3_ref, out_ref):
    f32 = jnp.float32
    # Folded fc1 (contains bert_out / num / embedding Linears + original fc1).
    h1 = jnp.dot(x_ref[...], w1_ref[...], preferred_element_type=f32) + b1_ref[...]
    h1 = jnp.maximum(h1, 0.0).astype(w2_ref.dtype)
    # fc2 + ReLU
    h2 = jnp.dot(h1, w2_ref[...], preferred_element_type=f32) + b2_ref[...]
    h2 = jnp.maximum(h2, 0.0).astype(w3_ref.dtype)
    # fc3 (lane-padded to 128 output columns; column 0 is the real output)
    out_ref[...] = jnp.dot(h2, w3_ref[...], preferred_element_type=f32) + b3_ref[...]


def _round_up(x, m):
    return (x + m - 1) // m * m


def final_model_head(x_in, fused):
    """Fused Pallas call: the entire post-gather compute of Final_Model.forward."""
    B = x_in.shape[0]
    if B >= 256:
        TB = 256
        B_pad = _round_up(B, TB)
    else:
        B_pad = _round_up(B, 16)   # bf16 sublane packing
        TB = B_pad
    if B_pad != B:
        x_in = jnp.pad(x_in, ((0, B_pad - B), (0, 0)))

    w1, b1 = fused['w1'], fused['b1']
    w2, b2 = fused['w2'], fused['b2']
    w3, b3 = fused['w3'], fused['b3']

    grid = (B_pad // TB,)
    flops = 2 * B_pad * (D_IN * D_FC1 + D_FC1 * D_FC2 + D_FC2 * D_OUT_PAD)
    bytes_accessed = (w1.size * 2 + w2.size * 2 + w3.size * 2
                      + (b1.size + b2.size + b3.size) * 4
                      + B_pad * D_IN * 2 + B_pad * D_OUT_PAD * 4)

    out = pl.pallas_call(
        _head_kernel,
        out_shape=jax.ShapeDtypeStruct((B_pad, D_OUT_PAD), jnp.float32),
        grid=grid,
        in_specs=[
            pl.BlockSpec((TB, D_IN), lambda i: (i, 0)),            # activations
            pl.BlockSpec((D_IN, D_FC1), lambda i: (0, 0)),         # W1 (resident)
            pl.BlockSpec((1, D_FC1), lambda i: (0, 0)),            # b1
            pl.BlockSpec((D_FC1, D_FC2), lambda i: (0, 0)),        # W2 (resident)
            pl.BlockSpec((1, D_FC2), lambda i: (0, 0)),            # b2
            pl.BlockSpec((D_FC2, D_OUT_PAD), lambda i: (0, 0)),    # W3 (resident)
            pl.BlockSpec((1, D_OUT_PAD), lambda i: (0, 0)),        # b3
        ],
        out_specs=pl.BlockSpec((TB, D_OUT_PAD), lambda i: (i, 0)),
        compiler_params=pltpu.CompilerParams(
            dimension_semantics=("parallel",)),
        cost_estimate=pl.CostEstimate(flops=flops, transcendentals=0,
                                      bytes_accessed=bytes_accessed),
    )(x_in, w1, b1, w2, b2, w3, b3)

    return out[:B, :1]   # drop batch padding and the 127 zero output lanes


def fold_params(params):
    """Fold the three pre-concat Linears into fc1 (exact at eval: Dropout==id)."""
    W1 = params['w_fc1']                       # [1024, 512]
    W1_bert = W1[0:D_BERT_OUT]                 # rows for the bert_out slab
    W1_num = W1[D_BERT_OUT:D_BERT_OUT + D_NUM]
    W1_cat = W1[D_BERT_OUT + D_NUM:D_ALL]

    w_bert_fold = params['w_bert'] @ W1_bert   # [768, 512]
    w_num_fold = params['w_num'] @ W1_num      # [1, 512]
    w_cat_fold = params['w_emb'] @ W1_cat      # [74, 512]
    b_fold = (params['b_bert'] @ W1_bert + params['b_num'] @ W1_num
              + params['b_emb'] @ W1_cat + params['b_fc1'])        # [1, 512]

    pad_rows = D_IN - (D_BERT_H + N_EMB + 1)   # 53 zero rows
    w1_fused = jnp.concatenate(
        [w_bert_fold, w_cat_fold, w_num_fold,
         jnp.zeros((pad_rows, D_FC1), jnp.float32)], axis=0)        # [896, 512]

    w3_pad = jnp.concatenate(
        [params['w_fc3'], jnp.zeros((D_FC2, D_OUT_PAD - 1), jnp.float32)], axis=1)
    b3_pad = jnp.concatenate(
        [params['b_fc3'], jnp.zeros((1, D_OUT_PAD - 1), jnp.float32)], axis=1)

    return {
        'w1': w1_fused.astype(jnp.bfloat16), 'b1': b_fold,
        'w2': params['w_fc2'].astype(jnp.bfloat16), 'b2': params['b_fc2'],
        'w3': w3_pad.astype(jnp.bfloat16), 'b3': b3_pad,
    }


def build_fused_input(data, params):
    """Categorical gathers + lane-dense packing of [bert | cat_emb | points | 0]."""
    outs = [jnp.take(tbl, idx, axis=0)
            for tbl, idx in zip(params['emb_tables'], data['cat'])]
    x_cat = jnp.concatenate(outs, axis=1).astype(jnp.float32)      # [B, 74]
    points = data['points'].reshape(-1, 1).astype(jnp.float32)     # [B, 1]
    # TODO(synk): pretrained transformers.BertModel (12-layer encoder) is not
    # reproduced here; its pooled output [B, 768] is supplied as an input.
    bert_pooled = data['bert_pooled'].astype(jnp.float32)          # [B, 768]
    B = bert_pooled.shape[0]
    pad = jnp.zeros((B, D_IN - D_BERT_H - N_EMB - 1), jnp.float32)
    x_in = jnp.concatenate([bert_pooled, x_cat, points, pad], axis=1)
    return x_in.astype(jnp.bfloat16)


def final_model_forward(data, params, fused):
    x_in = build_fused_input(data, params)
    return final_model_head(x_in, fused)


def final_model_reference(data, params):
    """Plain-JAX f32 reference of the original (unfolded) module at eval."""
    outs = [jnp.take(tbl, idx, axis=0)
            for tbl, idx in zip(params['emb_tables'], data['cat'])]
    x_cat = jnp.concatenate(outs, axis=1).astype(jnp.float32)
    points = data['points'].reshape(-1, 1).astype(jnp.float32)
    bert = data['bert_pooled'].astype(jnp.float32)
    x_cat_e = x_cat @ params['w_emb'] + params['b_emb']
    x_num = points @ params['w_num'] + params['b_num']
    x_bert = bert @ params['w_bert'] + params['b_bert']
    x_all = jnp.concatenate([x_bert, x_num, x_cat_e], axis=1)
    h1 = jnp.maximum(x_all @ params['w_fc1'] + params['b_fc1'], 0.0)
    h2 = jnp.maximum(h1 @ params['w_fc2'] + params['b_fc2'], 0.0)
    return h2 @ params['w_fc3'] + params['b_fc3']


def init_params(key):
    ks = jax.random.split(key, 17)

    def lin(kw, kb, fan_in, fan_out):
        bound = 1.0 / np.sqrt(fan_in)
        w = jax.random.uniform(kw, (fan_in, fan_out), jnp.float32, -bound, bound)
        b = jax.random.uniform(kb, (1, fan_out), jnp.float32, -bound, bound)
        return w, b

    params = {}
    params['emb_tables'] = [
        jax.random.normal(ks[i], (n + 2, e), jnp.float32)
        for i, (n, e) in enumerate(EMB_SIZE)
    ]
    params['w_emb'], params['b_emb'] = lin(ks[5], ks[6], N_EMB, D_CAT)
    params['w_num'], params['b_num'] = lin(ks[7], ks[8], 1, D_NUM)
    params['w_bert'], params['b_bert'] = lin(ks[9], ks[10], D_BERT_H, D_BERT_OUT)
    params['w_fc1'], params['b_fc1'] = lin(ks[11], ks[12], D_ALL, D_FC1)
    params['w_fc2'], params['b_fc2'] = lin(ks[13], ks[14], D_FC1, D_FC2)
    params['w_fc3'], params['b_fc3'] = lin(ks[15], ks[16], D_FC2, 1)
    return params


if __name__ == "__main__":
    key = jax.random.PRNGKey(0)
    kp, kd = jax.random.split(key)
    params = init_params(kp)
    fused = fold_params(params)

    B = 8
    kds = jax.random.split(kd, 7)
    data = {
        'cat': [jax.random.randint(kds[i], (B,), 0, n + 2, dtype=jnp.int32)
                for i, (n, _) in enumerate(EMB_SIZE)],
        'points': jax.random.uniform(kds[5], (B,), jnp.float32, 80.0, 100.0),
        'bert_pooled': jax.random.normal(kds[6], (B, D_BERT_H), jnp.float32),
    }

    out = final_model_forward(data, params, fused)
    out = jax.block_until_ready(out)
    assert out.shape == (B, 1) and out.dtype == jnp.float32

    ref = final_model_reference(data, params)
    rel_err = float(jnp.max(jnp.abs(out - ref)) / (jnp.max(jnp.abs(ref)) + 1e-6))
    assert rel_err < 0.1, f"relative error too large: {rel_err}"

    print("KERNEL_OK")
</pallas_src>

<mosaic_0001>
module attributes {stable_mosaic.version = 11 : i64} {
  func.func @_head_kernel(%arg0: i32, %arg1: memref<16x896xbf16, #tpu.memory_space<vmem>>, %arg2: memref<896x512xbf16, #tpu.memory_space<vmem>>, %arg3: memref<1x512xf32, #tpu.memory_space<vmem>>, %arg4: memref<512x256xbf16, #tpu.memory_space<vmem>>, %arg5: memref<1x256xf32, #tpu.memory_space<vmem>>, %arg6: memref<256x128xbf16, #tpu.memory_space<vmem>>, %arg7: memref<1x128xf32, #tpu.memory_space<vmem>>, %arg8: memref<16x128xf32, #tpu.memory_space<vmem>>) attributes {dimension_semantics = [#tpu.dimension_semantics<parallel>], iteration_bounds = array<i64: 1>, scalar_prefetch = 0 : i64, scratch_operands = 0 : i64, tpu.core_type = #tpu.core_type<tc>, window_params = [{transform_indices = @transform_0, window_bounds = array<i64: 16, 896>}, {pipeline_mode = #tpu.pipeline_mode<synchronous>, transform_indices = @transform_1, window_bounds = array<i64: 896, 512>}, {pipeline_mode = #tpu.pipeline_mode<synchronous>, transform_indices = @transform_2, window_bounds = array<i64: 1, 512>}, {pipeline_mode = #tpu.pipeline_mode<synchronous>, transform_indices = @transform_3, window_bounds = array<i64: 512, 256>}, {pipeline_mode = #tpu.pipeline_mode<synchronous>, transform_indices = @transform_4, window_bounds = array<i64: 1, 256>}, {pipeline_mode = #tpu.pipeline_mode<synchronous>, transform_indices = @transform_5, window_bounds = array<i64: 256, 128>}, {pipeline_mode = #tpu.pipeline_mode<synchronous>, transform_indices = @transform_6, window_bounds = array<i64: 1, 128>}, {transform_indices = @transform_7, window_bounds = array<i64: 16, 128>}]} {
    %c0 = arith.constant 0 : index
    %c0_0 = arith.constant 0 : index
    %0 = vector.load %arg1[%c0, %c0_0] : memref<16x896xbf16, #tpu.memory_space<vmem>>, vector<16x896xbf16>
    %c0_1 = arith.constant 0 : index
    %c0_2 = arith.constant 0 : index
    %1 = vector.load %arg2[%c0_1, %c0_2] : memref<896x512xbf16, #tpu.memory_space<vmem>>, vector<896x512xbf16>
    %cst = arith.constant dense<0.000000e+00> : vector<16x512xf32>
    %2 = tpu.matmul %0, %1, %cst {dimension_numbers = #tpu.dot_dimension_numbers<[1], [0], [0], [1], [0, 0, 1, 1], [], []>} : vector<16x896xbf16>, vector<896x512xbf16>, vector<16x512xf32> -> vector<16x512xf32>
    %c0_3 = arith.constant 0 : index
    %c0_4 = arith.constant 0 : index
    %3 = vector.load %arg3[%c0_3, %c0_4] : memref<1x512xf32, #tpu.memory_space<vmem>>, vector<1x512xf32>
    %4 = vector.broadcast %3 : vector<1x512xf32> to vector<16x512xf32>
    %5 = arith.addf %2, %4 : vector<16x512xf32>
    %cst_5 = arith.constant 0.000000e+00 : f32
    %6 = vector.broadcast %cst_5 : f32 to vector<16x512xf32>
    %7 = arith.maximumf %5, %6 : vector<16x512xf32>
    %8 = arith.truncf %7 : vector<16x512xf32> to vector<16x512xbf16>
    %c0_6 = arith.constant 0 : index
    %c0_7 = arith.constant 0 : index
    %9 = vector.load %arg4[%c0_6, %c0_7] : memref<512x256xbf16, #tpu.memory_space<vmem>>, vector<512x256xbf16>
    %cst_8 = arith.constant dense<0.000000e+00> : vector<16x256xf32>
    %10 = tpu.matmul %8, %9, %cst_8 {dimension_numbers = #tpu.dot_dimension_numbers<[1], [0], [0], [1], [0, 0, 1, 1], [], []>} : vector<16x512xbf16>, vector<512x256xbf16>, vector<16x256xf32> -> vector<16x256xf32>
    %c0_9 = arith.constant 0 : index
    %c0_10 = arith.constant 0 : index
    %11 = vector.load %arg5[%c0_9, %c0_10] : memref<1x256xf32, #tpu.memory_space<vmem>>, vector<1x256xf32>
    %12 = vector.broadcast %11 : vector<1x256xf32> to vector<16x256xf32>
    %13 = arith.addf %10, %12 : vector<16x256xf32>
    %cst_11 = arith.constant 0.000000e+00 : f32
    %14 = vector.broadcast %cst_11 : f32 to vector<16x256xf32>
    %15 = arith.maximumf %13, %14 : vector<16x256xf32>
    %16 = arith.truncf %15 : vector<16x256xf32> to vector<16x256xbf16>
    %c0_12 = arith.constant 0 : index
    %c0_13 = arith.constant 0 : index
    %17 = vector.load %arg6[%c0_12, %c0_13] : memref<256x128xbf16, #tpu.memory_space<vmem>>, vector<256x128xbf16>
    %cst_14 = arith.constant dense<0.000000e+00> : vector<16x128xf32>
    %18 = tpu.matmul %16, %17, %cst_14 {dimension_numbers = #tpu.dot_dimension_numbers<[1], [0], [0], [1], [0, 0, 1, 1], [], []>} : vector<16x256xbf16>, vector<256x128xbf16>, vector<16x128xf32> -> vector<16x128xf32>
    %c0_15 = arith.constant 0 : index
    %c0_16 = arith.constant 0 : index
    %19 = vector.load %arg7[%c0_15, %c0_16] : memref<1x128xf32, #tpu.memory_space<vmem>>, vector<1x128xf32>
    %20 = vector.broadcast %19 : vector<1x128xf32> to vector<16x128xf32>
    %21 = arith.addf %18, %20 : vector<16x128xf32>
    %c0_17 = arith.constant 0 : index
    %c0_18 = arith.constant 0 : index
    %22 = vector.load %arg8[%c0_17, %c0_18] : memref<16x128xf32, #tpu.memory_space<vmem>>, vector<16x128xf32>
    tpu.vector_store %arg8[%c0_17, %c0_18], %21 {strides = array<i32>} : memref<16x128xf32, #tpu.memory_space<vmem>>, vector<16x128xf32>,
    return
  }
  func.func @transform_0(%arg0: i32) -> (i32, i32) {
    %c0_i32 = arith.constant 0 : i32
    %c0_i32_0 = arith.constant 0 : i32
    return %arg0, %c0_i32 : i32, i32
  }
  func.func @transform_1(%arg0: i32) -> (i32, i32) {
    %c0_i32 = arith.constant 0 : i32
    %c0_i32_0 = arith.constant 0 : i32
    %c0_i32_1 = arith.constant 0 : i32
    return %c0_i32, %c0_i32_0 : i32, i32
  }
  func.func @transform_2(%arg0: i32) -> (i32, i32) {
    %c0_i32 = arith.constant 0 : i32
    %c0_i32_0 = arith.constant 0 : i32
    %c0_i32_1 = arith.constant 0 : i32
    return %c0_i32, %c0_i32_0 : i32, i32
  }
  func.func @transform_3(%arg0: i32) -> (i32, i32) {
    %c0_i32 = arith.constant 0 : i32
    %c0_i32_0 = arith.constant 0 : i32
    %c0_i32_1 = arith.constant 0 : i32
    return %c0_i32, %c0_i32_0 : i32, i32
  }
  func.func @transform_4(%arg0: i32) -> (i32, i32) {
    %c0_i32 = arith.constant 0 : i32
    %c0_i32_0 = arith.constant 0 : i32
    %c0_i32_1 = arith.constant 0 : i32
    return %c0_i32, %c0_i32_0 : i32, i32
  }
  func.func @transform_5(%arg0: i32) -> (i32, i32) {
    %c0_i32 = arith.constant 0 : i32
    %c0_i32_0 = arith.constant 0 : i32
    %c0_i32_1 = arith.constant 0 : i32
    return %c0_i32, %c0_i32_0 : i32, i32
  }
  func.func @transform_6(%arg0: i32) -> (i32, i32) {
    %c0_i32 = arith.constant 0 : i32
    %c0_i32_0 = arith.constant 0 : i32
    %c0_i32_1 = arith.constant 0 : i32
    return %c0_i32, %c0_i32_0 : i32, i32
  }
  func.func @transform_7(%arg0: i32) -> (i32, i32) {
    %c0_i32 = arith.constant 0 : i32
    %c0_i32_0 = arith.constant 0 : i32
    return %arg0, %c0_i32 : i32, i32
  }
}

</mosaic_0001>

<bundles_post_ra>
// kernel: tpu_custom_call.1
= control target key start
LH: loop header
LB: loop body
LE: loop exit
PB: predicated region body
PF: predicated region fallthrough
CT: control target
= control target key end

     0   :  { %12 = vsyncpa [#allocation3], 0  ;;  %s3673_s0 = inlined_call_operand.hbm [shape: bf16[16,896], index: 0, kind: input, shape index: {}]   ;;  %s3674_s1 = inlined_call_operand.hbm [shape: bf16[896,512], index: 1, kind: input, shape index: {}]   ;;  %s3675_s2 = inlined_call_operand.vmem [shape: f32[1,512], index: 2, kind: input, shape index: {}]   ;;  %s3676_s3 = inlined_call_operand.hbm [shape: bf16[512,256], index: 3, kind: input, shape index: {}]   ;;  %s3677_s4 = inlined_call_operand.vmem [shape: f32[1,256], index: 4, kind: input, shape index: {}]   ;;  %s3678_s5 = inlined_call_operand.hbm [shape: bf16[256,128], index: 5, kind: input, shape index: {}]   ;;  %s3679_s6 = inlined_call_operand.vmem [shape: f32[1,128], index: 6, kind: input, shape index: {}]   ;;  %s3680_s7 = inlined_call_operand.hbm [shape: f32[16,128], index: 7, kind: output, shape index: {}]  }
   0x1   :  { %13 = vsyncpa [#allocation6], 0 }
   0x2   :  { %14 = vsyncpa [#allocation9], 0 }
   0x3   :  { %15 = vsyncpa [#allocation4], 0  ;;  %s3498_s24 = smov [#allocation5]   ;;  %s3380_s28 = scalar_lea.hbm %s3674_s1, 28672 }
   0x4   :  { %s33_s25 = sshll.u32 %s3498_s24, 4  ;;  %p3381_p0 = scmp.ne.s32.totalorder %s3674_s1, %s3380_s28  ;;  %s34_s25 = int_to_ptr.vmem [resolvable:$true] %s33_s25 }
   0x5   :  { %p3384_p1 = scmp.lt.u32.totalorder %s3380_s28, %s3674_s1 }
   0x7   :  { %p3386_p2 = pnand %p3384_p1, %p3381_p0 }
   0x9   :  { %3389 = shalt.err (!%p3386_p2)
}
   0xa   :  { %s3390_s10 = scalar_lea.vmem %s34_s25, 28672  ;;  %p3395_p4 = scmp.lt.s32.totalorder %s34_s25, %s34_s25 }
   0xb   :  { %p3391_p3 = scmp.ne.s32.totalorder %s34_s25, %s3390_s10  ;;  %p3396_p5 = scmp.lt.s32.totalorder %s3390_s10, %s3390_s10 }
   0xd   :  { %p3397_p6 = por %p3396_p5, %p3395_p4 }
   0xf   :  { %p3398_p7 = pnand %p3397_p6, %p3391_p3 }
  0x11   :  { %3401 = shalt.err (!%p3398_p7)
}
  0x12   :  { %s3499_s11 = smov 256   ;;  %s3500_s12 = smov 16  }
  0x13   :  { %39 = dma.hbm_to_vmem [thread:$0]  %s3674_s1, 28672, %s34_s25, [#allocation6], %s3499_s11, %s3499_s11, %s3500_s12  }
  0x14   :  { %s3501_s15 = smov [#allocation2]   ;;  %s3402_s19 = scalar_lea.hbm %s3673_s0, 896 }
  0x15   :  { %s21_s16 = sshll.u32 %s3501_s15, 4  ;;  %p3403_p8 = scmp.ne.s32.totalorder %s3673_s0, %s3402_s19  ;;  %s22_s16 = int_to_ptr.vmem [resolvable:$true] %s21_s16 }
  0x16   :  { %p3406_p9 = scmp.lt.u32.totalorder %s3402_s19, %s3673_s0 }
  0x18   :  { %p3408_p10 = pnand %p3406_p9, %p3403_p8 }
  0x1a   :  { %3411 = shalt.err (!%p3408_p10)
}
  0x1b   :  { %s3412_s24 = scalar_lea.vmem %s22_s16, 896  ;;  %p3417_p12 = scmp.lt.s32.totalorder %s22_s16, %s22_s16 }
  0x1c   :  { %p3413_p11 = scmp.ne.s32.totalorder %s22_s16, %s3412_s24  ;;  %p3418_p13 = scmp.lt.s32.totalorder %s3412_s24, %s3412_s24 }
  0x1e   :  { %p3419_p0 = por %p3418_p13, %p3417_p12 }
  0x20   :  { %p3420_p1 = pnand %p3419_p0, %p3413_p11 }
  0x22   :  { %3423 = shalt.err (!%p3420_p1)
}
  0x23   :  { %s3502_s1 = smov 448   ;;  %s3503_s25 = smov 28  }
  0x24   :  { %27 = dma.hbm_to_vmem [thread:$0]  %s3673_s0, 896, %s22_s16, [#allocation3], %s3502_s1, %s3502_s1, %s3503_s25  }
  0x25   :  { %s3504_s28 = smov [#allocation7]   ;;  %s3424_s9 = scalar_lea.hbm %s3676_s3, 8192 }
  0x26   :  { %s47_s29 = sshll.u32 %s3504_s28, 4  ;;  %p3425_p2 = scmp.ne.s32.totalorder %s3676_s3, %s3424_s9  ;;  %s48_s29 = int_to_ptr.vmem [resolvable:$true] %s47_s29 }
  0x27   :  { %p3428_p3 = scmp.lt.u32.totalorder %s3424_s9, %s3676_s3 }
  0x29   :  { %p3430_p4 = pnand %p3428_p3, %p3425_p2 }
  0x2b   :  { %3433 = shalt.err (!%p3430_p4)
}
  0x2c   :  { %s3434_s14 = scalar_lea.vmem %s48_s29, 8192  ;;  %p3439_p6 = scmp.lt.s32.totalorder %s48_s29, %s48_s29 }
  0x2d   :  { %p3435_p5 = scmp.ne.s32.totalorder %s48_s29, %s3434_s14  ;;  %p3440_p7 = scmp.lt.s32.totalorder %s3434_s14, %s3434_s14 }
  0x2f   :  { %p3441_p8 = por %p3440_p7, %p3439_p6 }
  0x31   :  { %p3442_p9 = pnand %p3441_p8, %p3435_p5 }
  0x33   :  { %3445 = shalt.err (!%p3442_p9)
}
  0x34   :  { %s3505_s0 = smov 128   ;;  %s3506_s15 = smov 8  }
  0x35   :  { %53 = dma.hbm_to_vmem [thread:$0]  %s3676_s3, 8192, %s48_s29, [#allocation6], %s3505_s0, %s3505_s0, %s3506_s15  }
  0x36   :  { %s3507_s18 = smov [#allocation8]   ;;  %s3446_s22 = scalar_lea.hbm %s3678_s5, 2048 }
  0x37   :  { %s61_s19 = sshll.u32 %s3507_s18, 4  ;;  %p3447_p10 = scmp.ne.s32.totalorder %s3678_s5, %s3446_s22  ;;  %s62_s19 = int_to_ptr.vmem [resolvable:$true] %s61_s19 }
  0x38   :  { %p3450_p11 = scmp.lt.u32.totalorder %s3446_s22, %s3678_s5 }
  0x3a   :  { %p3452_p12 = pnand %p3450_p11, %p3447_p10 }
  0x3c   :  { %3455 = shalt.err (!%p3452_p12)
}
  0x3d   :  { %s3456_s26 = scalar_lea.vmem %s62_s19, 2048  ;;  %p3461_p0 = scmp.lt.s32.totalorder %s62_s19, %s62_s19 }
  0x3e   :  { %p3457_p13 = scmp.ne.s32.totalorder %s62_s19, %s3456_s26  ;;  %p3462_p1 = scmp.lt.s32.totalorder %s3456_s26, %s3456_s26 }
  0x40   :  { %p3463_p2 = por %p3462_p1, %p3461_p0 }
  0x42   :  { %p3464_p3 = pnand %p3463_p2, %p3457_p13 }
  0x44   :  { %3467 = shalt.err (!%p3464_p3)
}
  0x45   :  { %s3508_s3 = smov 64   ;;  %s3509_s27 = smov 4  }
  0x46   :  { %67 = dma.hbm_to_vmem [thread:$0]  %s3678_s5, 2048, %s62_s19, [#allocation9], %s3508_s3, %s3508_s3, %s3509_s27  }
  0x47   :  { %3490 = dma.done.wait [#allocation3], 896  }
  0x48   :  { %3491 = vsyncadd [#allocation3], 4294966400 }
  0x49   :  { %3492 = dma.done.wait [#allocation6], 36864  }
  0x4a   :  { %3493 = vsyncadd [#allocation6], 4294930432 }
  0x4b   :  { %3494 = dma.done.wait [#allocation9], 2048  }
  0x4c   :  { %3495 = vsyncadd [#allocation9], 4294965248  ;;  %v2922_v0 = vld [vmem:[#allocation5 + $0x4] ss:$16 sps:$4 sm:$0xff]   ;;  %v2926_v2 = vld [vmem:[#allocation5] ss:$16 sps:$4 sm:$0xff]  }
  0x4d   :  { %v2924_v1 = vld [vmem:[#allocation5 + $0x204] ss:$16 sps:$4 sm:$0xff]   ;;  %1493 = vmatprep.subr.bf16.mxu1 %v2922_v0  ;;  %v2927_v3 = vld [vmem:[#allocation5 + $0x200] ss:$16 sps:$4 sm:$0xff]   ;;  %v3020_v49 = vld [vmem:[#allocation2 + $0x4] ss:$28 sps:$4 sm:$0xff]  }
  0x4e   :  { %1536 = vmatprep.subr.bf16.mxu0 %v2924_v1  ;;  %v2928_v4 = vld [vmem:[#allocation5 + $0x24] ss:$16 sps:$4 sm:$0xff]   ;;  %1494 = vmatpush1.bf16.msra.mxu1 %v2926_v2  ;;  %v2932_v6 = vld [vmem:[#allocation5 + $0x20] ss:$16 sps:$4 sm:$0xff]   ;;  %s3511_s10 = smov [#allocation10]  }
  0x4f   :  { %1537 = vmatpush1.bf16.msra.mxu0 %v2927_v3  ;;  %v2930_v5 = vld [vmem:[#allocation5 + $0x224] ss:$16 sps:$4 sm:$0xff]   ;;  %1495 = vmatprep.subr.bf16.mxu1 %v2928_v4  ;;  %v2933_v7 = vld [vmem:[#allocation5 + $0x220] ss:$16 sps:$4 sm:$0xff]   ;;  %v3029_v3 = vld [vmem:[#allocation5 + $0xc] ss:$16 sps:$4 sm:$0xff]  }
  0x50   :  { %1538 = vmatprep.subr.bf16.mxu0 %v2930_v5  ;;  %v2934_v8 = vld [vmem:[#allocation5 + $0x44] ss:$16 sps:$4 sm:$0xff]   ;;  %v2938_v10 = vld [vmem:[#allocation5 + $0x40] ss:$16 sps:$4 sm:$0xff]   ;;  %1525 = vmatprep.mubr.bf16.mxu1 %v3020_v49  ;;  %s2520_s11 = sshll.u32 %s3511_s10, 4  ;;  %s2521_s11 = int_to_ptr.vmem [resolvable:$true] %s2520_s11 }
  0x51   :  { %v2936_v9 = vld [vmem:[#allocation5 + $0x244] ss:$16 sps:$4 sm:$0xff]   ;;  %v2939_v11 = vld [vmem:[#allocation5 + $0x240] ss:$16 sps:$4 sm:$0xff]   ;;  %s3468_s12 = scalar_lea.vmem %s2521_s11, 256  ;;  %p3473_p5 = scmp.lt.s32.totalorder %s2521_s11, %s2521_s11 }
  0x52   :  { %1496 = vmatpush1.bf16.msra.mxu1 %v2932_v6  ;;  %v2940_v12 = vld [vmem:[#allocation5 + $0x64] ss:$16 sps:$4 sm:$0xff]   ;;  %v2944_v14 = vld [vmem:[#allocation5 + $0x60] ss:$16 sps:$4 sm:$0xff]   ;;  %p3469_p4 = scmp.ne.s32.totalorder %s2521_s11, %s3468_s12  ;;  %p3474_p6 = scmp.lt.s32.totalorder %s3468_s12, %s3468_s12 }
  0x53   :  { %1539 = vmatpush1.bf16.msra.mxu0 %v2933_v7  ;;  %1497 = vmatprep.subr.bf16.mxu1 %v2934_v8  ;;  %v2942_v13 = vld [vmem:[#allocation5 + $0x264] ss:$16 sps:$4 sm:$0xff]   ;;  %v2945_v15 = vld [vmem:[#allocation5 + $0x260] ss:$16 sps:$4 sm:$0xff]   ;;  %v3027_v7 = vld [vmem:[#allocation5 + $0x8] ss:$16 sps:$4 sm:$0xff]  }
  0x54   :  { %1540 = vmatprep.subr.bf16.mxu0 %v2936_v9  ;;  %v2946_v16 = vld [vmem:[#allocation5 + $0x84] ss:$16 sps:$4 sm:$0xff]   ;;  %v2950_v18 = vld [vmem:[#allocation5 + $0x80] ss:$16 sps:$4 sm:$0xff]   ;;  %v3035_v9 = vld [vmem:[#allocation5 + $0x2c] ss:$16 sps:$4 sm:$0xff]   ;;  %p3475_p7 = por %p3474_p6, %p3473_p5 }
  0x55   :  { %v2948_v17 = vld [vmem:[#allocation5 + $0x284] ss:$16 sps:$4 sm:$0xff]   ;;  %v2951_v19 = vld [vmem:[#allocation5 + $0x280] ss:$16 sps:$4 sm:$0xff]  }
  0x56   :  { %1498 = vmatpush1.bf16.msra.mxu1 %v2938_v10  ;;  %v2952_v20 = vld [vmem:[#allocation5 + $0xa4] ss:$16 sps:$4 sm:$0xff]   ;;  %v2956_v22 = vld [vmem:[#allocation5 + $0xa0] ss:$16 sps:$4 sm:$0xff]   ;;  %p3476_p8 = pnand %p3475_p7, %p3469_p4 }
  0x57   :  { %1541 = vmatpush1.bf16.msra.mxu0 %v2939_v11  ;;  %1499 = vmatprep.subr.bf16.mxu1 %v2940_v12  ;;  %v2954_v21 = vld [vmem:[#allocation5 + $0x2a4] ss:$16 sps:$4 sm:$0xff]   ;;  %v2957_v23 = vld [vmem:[#allocation5 + $0x2a0] ss:$16 sps:$4 sm:$0xff]   ;;  %v3033_v11 = vld [vmem:[#allocation5 + $0x28] ss:$16 sps:$4 sm:$0xff]  }
  0x58   :  { %1542 = vmatprep.subr.bf16.mxu0 %v2942_v13  ;;  %v2958_v24 = vld [vmem:[#allocation5 + $0xc4] ss:$16 sps:$4 sm:$0xff]   ;;  %v2962_v26 = vld [vmem:[#allocation5 + $0xc0] ss:$16 sps:$4 sm:$0xff]   ;;  %v3041_v13 = vld [vmem:[#allocation5 + $0x4c] ss:$16 sps:$4 sm:$0xff]  }
  0x59   :  { %v2960_v25 = vld [vmem:[#allocation5 + $0x2c4] ss:$16 sps:$4 sm:$0xff]   ;;  %v2963_v27 = vld [vmem:[#allocation5 + $0x2c0] ss:$16 sps:$4 sm:$0xff]  }
  0x5a   :  { %1500 = vmatpush1.bf16.msra.mxu1 %v2944_v14  ;;  %v2964_v28 = vld [vmem:[#allocation5 + $0xe4] ss:$16 sps:$4 sm:$0xff]   ;;  %v2968_v30 = vld [vmem:[#allocation5 + $0xe0] ss:$16 sps:$4 sm:$0xff]  }
  0x5b   :  { %1543 = vmatpush1.bf16.msra.mxu0 %v2945_v15  ;;  %1501 = vmatprep.subr.bf16.mxu1 %v2946_v16  ;;  %v2966_v29 = vld [vmem:[#allocation5 + $0x2e4] ss:$16 sps:$4 sm:$0xff]   ;;  %v2969_v31 = vld [vmem:[#allocation5 + $0x2e0] ss:$16 sps:$4 sm:$0xff]   ;;  %v3039_v15 = vld [vmem:[#allocation5 + $0x48] ss:$16 sps:$4 sm:$0xff]  }
  0x5c   :  { %1544 = vmatprep.subr.bf16.mxu0 %v2948_v17  ;;  %v2970_v32 = vld [vmem:[#allocation5 + $0x104] ss:$16 sps:$4 sm:$0xff]   ;;  %v2974_v34 = vld [vmem:[#allocation5 + $0x100] ss:$16 sps:$4 sm:$0xff]   ;;  %v3047_v17 = vld [vmem:[#allocation5 + $0x6c] ss:$16 sps:$4 sm:$0xff]  }
  0x5d   :  { %v2972_v33 = vld [vmem:[#allocation5 + $0x304] ss:$16 sps:$4 sm:$0xff]   ;;  %v2975_v35 = vld [vmem:[#allocation5 + $0x300] ss:$16 sps:$4 sm:$0xff]  }
  0x5e   :  { %1502 = vmatpush1.bf16.msra.mxu1 %v2950_v18  ;;  %v2976_v36 = vld [vmem:[#allocation5 + $0x124] ss:$16 sps:$4 sm:$0xff]   ;;  %v2980_v38 = vld [vmem:[#allocation5 + $0x120] ss:$16 sps:$4 sm:$0xff]  }
  0x5f   :  { %1545 = vmatpush1.bf16.msra.mxu0 %v2951_v19  ;;  %1503 = vmatprep.subr.bf16.mxu1 %v2952_v20  ;;  %v2978_v37 = vld [vmem:[#allocation5 + $0x324] ss:$16 sps:$4 sm:$0xff]   ;;  %v2981_v39 = vld [vmem:[#allocation5 + $0x320] ss:$16 sps:$4 sm:$0xff]   ;;  %v3045_v19 = vld [vmem:[#allocation5 + $0x68] ss:$16 sps:$4 sm:$0xff]  }
  0x60   :  { %1546 = vmatprep.subr.bf16.mxu0 %v2954_v21  ;;  %v2982_v40 = vld [vmem:[#allocation5 + $0x144] ss:$16 sps:$4 sm:$0xff]   ;;  %v2986_v42 = vld [vmem:[#allocation5 + $0x140] ss:$16 sps:$4 sm:$0xff]   ;;  %v3053_v21 = vld [vmem:[#allocation5 + $0x8c] ss:$16 sps:$4 sm:$0xff]  }
  0x61   :  { %v2984_v41 = vld [vmem:[#allocation5 + $0x344] ss:$16 sps:$4 sm:$0xff]   ;;  %v2987_v43 = vld [vmem:[#allocation5 + $0x340] ss:$16 sps:$4 sm:$0xff]  }
  0x62   :  { %1504 = vmatpush1.bf16.msra.mxu1 %v2956_v22  ;;  %v2988_v44 = vld [vmem:[#allocation5 + $0x164] ss:$16 sps:$4 sm:$0xff]   ;;  %v2992_v46 = vld [vmem:[#allocation5 + $0x160] ss:$16 sps:$4 sm:$0xff]  }
  0x63   :  { %1547 = vmatpush1.bf16.msra.mxu0 %v2957_v23  ;;  %1505 = vmatprep.subr.bf16.mxu1 %v2958_v24  ;;  %v2990_v45 = vld [vmem:[#allocation5 + $0x364] ss:$16 sps:$4 sm:$0xff]   ;;  %v2993_v47 = vld [vmem:[#allocation5 + $0x360] ss:$16 sps:$4 sm:$0xff]   ;;  %v3051_v23 = vld [vmem:[#allocation5 + $0x88] ss:$16 sps:$4 sm:$0xff]  }
  0x64   :  { %1548 = vmatprep.subr.bf16.mxu0 %v2960_v25  ;;  %v2994_v48 = vld [vmem:[#allocation5 + $0x184] ss:$16 sps:$4 sm:$0xff]   ;;  %v2998_v52 = vld [vmem:[#allocation5 + $0x180] ss:$16 sps:$4 sm:$0xff]   ;;  %v3059_v25 = vld [vmem:[#allocation5 + $0xac] ss:$16 sps:$4 sm:$0xff]  }
  0x65   :  { %v2996_v50 = vld [vmem:[#allocation5 + $0x384] ss:$16 sps:$4 sm:$0xff]   ;;  %v2999_v53 = vld [vmem:[#allocation5 + $0x380] ss:$16 sps:$4 sm:$0xff]  }
  0x66   :  { %1506 = vmatpush1.bf16.msra.mxu1 %v2962_v26  ;;  %v3603_v51 = vld [vmem:[#allocation2 + $0xc] ss:$28 sps:$4 sm:$0xff]   ;;  %v3606_v4 = vld [vmem:[#allocation2] ss:$28 sps:$4 sm:$0xff]  }
  0x67   :  { %1549 = vmatpush1.bf16.msra.mxu0 %v2963_v27  ;;  %1507 = vmatprep.subr.bf16.mxu1 %v2964_v28  ;;  %v3000_v54 = vld [vmem:[#allocation5 + $0x1a4] ss:$16 sps:$4 sm:$0xff]   ;;  %v3004_v56 = vld [vmem:[#allocation5 + $0x1a0] ss:$16 sps:$4 sm:$0xff]   ;;  %v3057_v27 = vld [vmem:[#allocation5 + $0xa8] ss:$16 sps:$4 sm:$0xff]  }
  0x68   :  { %1550 = vmatprep.subr.bf16.mxu0 %v2966_v29  ;;  %1568 = vmatprep.mubr.bf16.mxu0 %v3603_v51  ;;  %v3002_v55 = vld [vmem:[#allocation5 + $0x3a4] ss:$16 sps:$4 sm:$0xff]   ;;  %v3005_v57 = vld [vmem:[#allocation5 + $0x3a0] ss:$16 sps:$4 sm:$0xff]   ;;  %v3065_v29 = vld [vmem:[#allocation5 + $0xcc] ss:$16 sps:$4 sm:$0xff]  }
  0x69   :  { %v3006_v58 = vld [vmem:[#allocation5 + $0x1c4] ss:$16 sps:$4 sm:$0xff]   ;;  %v3010_v60 = vld [vmem:[#allocation5 + $0x1c0] ss:$16 sps:$4 sm:$0xff]  }
  0x6a   :  { %1508 = vmatpush1.bf16.msra.mxu1 %v2968_v30  ;;  %v3008_v59 = vld [vmem:[#allocation5 + $0x3c4] ss:$16 sps:$4 sm:$0xff]   ;;  %v3011_v61 = vld [vmem:[#allocation5 + $0x3c0] ss:$16 sps:$4 sm:$0xff]  }
  0x6b   :  { %1551 = vmatpush1.bf16.msra.mxu0 %v2969_v31  ;;  %1509 = vmatprep.subr.bf16.mxu1 %v2970_v32  ;;  %v3012_v62 = vld [vmem:[#allocation5 + $0x1e4] ss:$16 sps:$4 sm:$0xff]   ;;  %v3016_v0 = vld [vmem:[#allocation5 + $0x1e0] ss:$16 sps:$4 sm:$0xff]   ;;  %v3063_v31 = vld [vmem:[#allocation5 + $0xc8] ss:$16 sps:$4 sm:$0xff]  }
  0x6c   :  { %1552 = vmatprep.subr.bf16.mxu0 %v2972_v33  ;;  %v3014_v63 = vld [vmem:[#allocation5 + $0x3e4] ss:$16 sps:$4 sm:$0xff]   ;;  %v3017_v1 = vld [vmem:[#allocation5 + $0x3e0] ss:$16 sps:$4 sm:$0xff]   ;;  %v3071_v33 = vld [vmem:[#allocation5 + $0xec] ss:$16 sps:$4 sm:$0xff]  }
  0x6d   :  { %v3026_v2 = vld [vmem:[#allocation5 + $0x404] ss:$16 sps:$4 sm:$0xff]   ;;  %v3608_v5 = vld [vmem:[#allocation2 + $0x8] ss:$28 sps:$4 sm:$0xff]  }
  0x6e   :  { %1510 = vmatpush1.bf16.msra.mxu1 %v2974_v34  ;;  %v3024_v6 = vld [vmem:[#allocation5 + $0x400] ss:$16 sps:$4 sm:$0xff]   ;;  %v3032_v8 = vld [vmem:[#allocation5 + $0x424] ss:$16 sps:$4 sm:$0xff]   ;;  %v3612_v34 = vld [vmem:[#allocation2 + $0x14] ss:$28 sps:$4 sm:$0xff]  }
  0x6f   :  { %1553 = vmatpush1.bf16.msra.mxu0 %v2975_v35  ;;  %1511 = vmatprep.subr.bf16.mxu1 %v2976_v36  ;;  %v3030_v10 = vld [vmem:[#allocation5 + $0x420] ss:$16 sps:$4 sm:$0xff]   ;;  %v3038_v12 = vld [vmem:[#allocation5 + $0x444] ss:$16 sps:$4 sm:$0xff]   ;;  %v3069_v36 = vld [vmem:[#allocation5 + $0xe8] ss:$16 sps:$4 sm:$0xff]  }
  0x70   :  { %1554 = vmatprep.subr.bf16.mxu0 %v2978_v37  ;;  %v3036_v14 = vld [vmem:[#allocation5 + $0x440] ss:$16 sps:$4 sm:$0xff]   ;;  %v3044_v16 = vld [vmem:[#allocation5 + $0x464] ss:$16 sps:$4 sm:$0xff]  }
  0x71   :  { %v3042_v18 = vld [vmem:[#allocation5 + $0x460] ss:$16 sps:$4 sm:$0xff]   ;;  %v3050_v20 = vld [vmem:[#allocation5 + $0x484] ss:$16 sps:$4 sm:$0xff]  }
  0x72   :  { %1512 = vmatpush1.bf16.msra.mxu1 %v2980_v38  ;;  %v3048_v22 = vld [vmem:[#allocation5 + $0x480] ss:$16 sps:$4 sm:$0xff]   ;;  %v3056_v24 = vld [vmem:[#allocation5 + $0x4a4] ss:$16 sps:$4 sm:$0xff]   ;;  %v3077_v38 = vld [vmem:[#allocation5 + $0x10c] ss:$16 sps:$4 sm:$0xff]  }
  0x73   :  { %1555 = vmatpush1.bf16.msra.mxu0 %v2981_v39  ;;  %1513 = vmatprep.subr.bf16.mxu1 %v2982_v40  ;;  %v3054_v26 = vld [vmem:[#allocation5 + $0x4a0] ss:$16 sps:$4 sm:$0xff]   ;;  %v3062_v28 = vld [vmem:[#allocation5 + $0x4c4] ss:$16 sps:$4 sm:$0xff]   ;;  %v3075_v40 = vld [vmem:[#allocation5 + $0x108] ss:$16 sps:$4 sm:$0xff]  }
  0x74   :  { %1556 = vmatprep.subr.bf16.mxu0 %v2984_v41  ;;  %v3060_v30 = vld [vmem:[#allocation5 + $0x4c0] ss:$16 sps:$4 sm:$0xff]   ;;  %v3068_v32 = vld [vmem:[#allocation5 + $0x4e4] ss:$16 sps:$4 sm:$0xff]  }
  0x75   :  { %v3066_v35 = vld [vmem:[#allocation5 + $0x4e0] ss:$16 sps:$4 sm:$0xff]   ;;  %v3074_v37 = vld [vmem:[#allocation5 + $0x504] ss:$16 sps:$4 sm:$0xff]  }
  0x76   :  { %1514 = vmatpush1.bf16.msra.mxu1 %v2986_v42  ;;  %v3072_v39 = vld [vmem:[#allocation5 + $0x500] ss:$16 sps:$4 sm:$0xff]   ;;  %v3080_v41 = vld [vmem:[#allocation5 + $0x524] ss:$16 sps:$4 sm:$0xff]   ;;  %v3083_v42 = vld [vmem:[#allocation5 + $0x12c] ss:$16 sps:$4 sm:$0xff]  }
  0x77   :  { %1557 = vmatpush1.bf16.msra.mxu0 %v2987_v43  ;;  %1515 = vmatprep.subr.bf16.mxu1 %v2988_v44  ;;  %v3078_v43 = vld [vmem:[#allocation5 + $0x520] ss:$16 sps:$4 sm:$0xff]   ;;  %v3081_v44 = vld [vmem:[#allocation5 + $0x128] ss:$16 sps:$4 sm:$0xff]  }
  0x78   :  { %1558 = vmatprep.subr.bf16.mxu0 %v2990_v45  ;;  %v3086_v45 = vld [vmem:[#allocation5 + $0x544] ss:$16 sps:$4 sm:$0xff]  }
  0x7a   :  { %1516 = vmatpush1.bf16.msra.mxu1 %v2992_v46  ;;  %v3089_v46 = vld [vmem:[#allocation5 + $0x14c] ss:$16 sps:$4 sm:$0xff]  }
  0x7b   :  { %1559 = vmatpush1.bf16.msra.mxu0 %v2993_v47  ;;  %1517 = vmatprep.subr.bf16.mxu1 %v2994_v48  ;;  %v3084_v47 = vld [vmem:[#allocation5 + $0x540] ss:$16 sps:$4 sm:$0xff]   ;;  %v3087_v48 = vld [vmem:[#allocation5 + $0x148] ss:$16 sps:$4 sm:$0xff]  }
  0x7c   :  { %1560 = vmatprep.subr.bf16.mxu0 %v2996_v50  ;;  %v3095_v50 = vld [vmem:[#allocation5 + $0x16c] ss:$16 sps:$4 sm:$0xff]  }
  0x7e   :  { %1518 = vmatpush1.bf16.msra.mxu1 %v2998_v52  ;;  %v3090_v52 = vld [vmem:[#allocation5 + $0x560] ss:$16 sps:$4 sm:$0xff]  }
  0x7f   :  { %1561 = vmatpush1.bf16.msra.mxu0 %v2999_v53  ;;  %1519 = vmatprep.subr.bf16.mxu1 %v3000_v54  ;;  %v3093_v53 = vld [vmem:[#allocation5 + $0x168] ss:$16 sps:$4 sm:$0xff]   ;;  %v3098_v54 = vld [vmem:[#allocation5 + $0x584] ss:$16 sps:$4 sm:$0xff]  }
  0x80   :  { %1562 = vmatprep.subr.bf16.mxu0 %v3002_v55  ;;  %v3101_v55 = vld [vmem:[#allocation5 + $0x18c] ss:$16 sps:$4 sm:$0xff]  }
  0x82   :  { %1520 = vmatpush1.bf16.msra.mxu1 %v3004_v56  ;;  %v3096_v56 = vld [vmem:[#allocation5 + $0x580] ss:$16 sps:$4 sm:$0xff]  }
  0x83   :  { %1563 = vmatpush1.bf16.msra.mxu0 %v3005_v57  ;;  %1521 = vmatprep.subr.bf16.mxu1 %v3006_v58  ;;  %v3099_v57 = vld [vmem:[#allocation5 + $0x188] ss:$16 sps:$4 sm:$0xff]   ;;  %v3104_v58 = vld [vmem:[#allocation5 + $0x5a4] ss:$16 sps:$4 sm:$0xff]  }
  0x84   :  { %1564 = vmatprep.subr.bf16.mxu0 %v3008_v59  ;;  %v3107_v59 = vld [vmem:[#allocation5 + $0x1ac] ss:$16 sps:$4 sm:$0xff]  }
  0x86   :  { %1522 = vmatpush1.bf16.msra.mxu1 %v3010_v60  ;;  %v3102_v60 = vld [vmem:[#allocation5 + $0x5a0] ss:$16 sps:$4 sm:$0xff]  }
  0x87   :  { %1565 = vmatpush1.bf16.msra.mxu0 %v3011_v61  ;;  %1523 = vmatprep.subr.bf16.mxu1 %v3012_v62  ;;  %v3105_v61 = vld [vmem:[#allocation5 + $0x1a8] ss:$16 sps:$4 sm:$0xff]   ;;  %v3110_v62 = vld [vmem:[#allocation5 + $0x5c4] ss:$16 sps:$4 sm:$0xff]  }
  0x88   :  { %1566 = vmatprep.subr.bf16.mxu0 %v3014_v63  ;;  %v3113_v63 = vld [vmem:[#allocation5 + $0x1cc] ss:$16 sps:$4 sm:$0xff]  }
  0x8a   :  { %1524 = vmatpush1.bf16.msra.mxu1 %v3016_v0  ;;  %v3108_v0 = vld [vmem:[#allocation5 + $0x5c0] ss:$16 sps:$4 sm:$0xff]  }
  0x8b   :  { %1567 = vmatpush1.bf16.msra.mxu0 %v3017_v1  ;;  %1665 = vmatprep.subr.bf16.mxu1 %v3029_v3  ;;  %v3111_v1 = vld [vmem:[#allocation5 + $0x1c8] ss:$16 sps:$4 sm:$0xff]   ;;  %v3119_v3 = vld [vmem:[#allocation5 + $0x1ec] ss:$16 sps:$4 sm:$0xff]  }
  0x8c   :  { %1579 = vmatprep.subr.bf16.mxu0 %v3026_v2  ;;  %v3116_v2 = vld [vmem:[#allocation5 + $0x5e4] ss:$16 sps:$4 sm:$0xff]  }
  0x8d   :  { %1526 = vmatmul.mubr.bf16.vlgmr.msra.gmra.mrb[0].mxu1 %v3606_v4 }
  0x8e   :  { %1569 = vmatmul.mubr.bf16.vlgmr.msra.gmra.mrb[0].mxu0 %v3608_v5  ;;  %1666 = vmatpush1.bf16.msra.mxu1 %v3027_v7  ;;  %v3117_v7 = vld [vmem:[#allocation5 + $0x1e8] ss:$16 sps:$4 sm:$0xff]  }
  0x8f   :  { %1580 = vmatpush1.bf16.msra.mxu0 %v3024_v6  ;;  %1667 = vmatprep.subr.bf16.mxu1 %v3035_v9  ;;  %v3114_v6 = vld [vmem:[#allocation5 + $0x5e0] ss:$16 sps:$4 sm:$0xff]   ;;  %v3128_v9 = vld [vmem:[#allocation5 + $0x20c] ss:$16 sps:$4 sm:$0xff]  }
  0x90   :  { %1581 = vmatprep.subr.bf16.mxu0 %v3032_v8  ;;  %1697 = vmatprep.mubr.bf16.mxu1 %v3020_v49  ;;  %v3092_v49 = vld [vmem:[#allocation5 + $0x564] ss:$16 sps:$4 sm:$0xff]  }
  0x91   :  { %1611 = vmatprep.mubr.bf16.mxu0 %v3612_v34  ;;  %v3125_v8 = vld [vmem:[#allocation5 + $0x604] ss:$16 sps:$4 sm:$0xff]  }
  0x92   :  { %1668 = vmatpush1.bf16.msra.mxu1 %v3033_v11  ;;  %v3123_v11 = vld [vmem:[#allocation5 + $0x600] ss:$16 sps:$4 sm:$0xff]  }
  0x93   :  { %1582 = vmatpush1.bf16.msra.mxu0 %v3030_v10  ;;  %1669 = vmatprep.subr.bf16.mxu1 %v3041_v13  ;;  %v3615_v10 = vld [vmem:[#allocation2 + $0x10] ss:$28 sps:$4 sm:$0xff]  }
  0x94   :  { %1583 = vmatprep.subr.bf16.mxu0 %v3038_v12  ;;  %v3126_v12 = vld [vmem:[#allocation5 + $0x208] ss:$16 sps:$4 sm:$0xff]   ;;  %v3131_v13 = vld [vmem:[#allocation5 + $0x624] ss:$16 sps:$4 sm:$0xff]  }
  0x96   :  { %1670 = vmatpush1.bf16.msra.mxu1 %v3039_v15  ;;  %v3129_v15 = vld [vmem:[#allocation5 + $0x620] ss:$16 sps:$4 sm:$0xff]  }
  0x97   :  { %1584 = vmatpush1.bf16.msra.mxu0 %v3036_v14  ;;  %1671 = vmatprep.subr.bf16.mxu1 %v3047_v17  ;;  %v3134_v14 = vld [vmem:[#allocation5 + $0x22c] ss:$16 sps:$4 sm:$0xff]   ;;  %v3137_v17 = vld [vmem:[#allocation5 + $0x644] ss:$16 sps:$4 sm:$0xff]  }
  0x98   :  { %1585 = vmatprep.subr.bf16.mxu0 %v3044_v16  ;;  %v3132_v16 = vld [vmem:[#allocation5 + $0x228] ss:$16 sps:$4 sm:$0xff]  }
  0x9a   :  { %1672 = vmatpush1.bf16.msra.mxu1 %v3045_v19  ;;  %v3510_v19 = vmov 0  }
  0x9b   :  { %1586 = vmatpush1.bf16.msra.mxu0 %v3042_v18  ;;  %1673 = vmatprep.subr.bf16.mxu1 %v3053_v21  ;;  %v3140_v18 = vld [vmem:[#allocation5 + $0x24c] ss:$16 sps:$4 sm:$0xff]   ;;  %v3138_v21 = vld [vmem:[#allocation5 + $0x248] ss:$16 sps:$4 sm:$0xff]  }
  0x9c   :  { %1587 = vmatprep.subr.bf16.mxu0 %v3050_v20  ;;  %v3135_v20 = vld [vmem:[#allocation5 + $0x640] ss:$16 sps:$4 sm:$0xff]  }
  0x9e   :  { %1674 = vmatpush1.bf16.msra.mxu1 %v3051_v23  ;;  %v3141_v23 = vld [vmem:[#allocation5 + $0x660] ss:$16 sps:$4 sm:$0xff]  }
  0x9f   :  { %1588 = vmatpush1.bf16.msra.mxu0 %v3048_v22  ;;  %1675 = vmatprep.subr.bf16.mxu1 %v3059_v25  ;;  %v3143_v22 = vld [vmem:[#allocation5 + $0x664] ss:$16 sps:$4 sm:$0xff]  }
  0xa0   :  { %1589 = vmatprep.subr.bf16.mxu0 %v3056_v24  ;;  %v3144_v24 = vld [vmem:[#allocation5 + $0x268] ss:$16 sps:$4 sm:$0xff]   ;;  %v3149_v25 = vld [vmem:[#allocation5 + $0x684] ss:$16 sps:$4 sm:$0xff]  }
  0xa2   :  { %1676 = vmatpush1.bf16.msra.mxu1 %v3057_v27  ;;  %v3147_v27 = vld [vmem:[#allocation5 + $0x680] ss:$16 sps:$4 sm:$0xff]  }
  0xa3   :  { %1590 = vmatpush1.bf16.msra.mxu0 %v3054_v26  ;;  %1677 = vmatprep.subr.bf16.mxu1 %v3065_v29  ;;  %v3152_v26 = vld [vmem:[#allocation5 + $0x28c] ss:$16 sps:$4 sm:$0xff]  }
  0xa4   :  { %1591 = vmatprep.subr.bf16.mxu0 %v3062_v28  ;;  %v3155_v28 = vld [vmem:[#allocation5 + $0x6a4] ss:$16 sps:$4 sm:$0xff]   ;;  %v3158_v29 = vld [vmem:[#allocation5 + $0x2ac] ss:$16 sps:$4 sm:$0xff]  }
  0xa6   :  { %1678 = vmatpush1.bf16.msra.mxu1 %v3063_v31  ;;  %v3156_v31 = vld [vmem:[#allocation5 + $0x2a8] ss:$16 sps:$4 sm:$0xff]  }
  0xa7   :  { %1592 = vmatpush1.bf16.msra.mxu0 %v3060_v30  ;;  %1679 = vmatprep.subr.bf16.mxu1 %v3071_v33  ;;  %v3153_v30 = vld [vmem:[#allocation5 + $0x6a0] ss:$16 sps:$4 sm:$0xff]   ;;  %v3164_v33 = vld [vmem:[#allocation5 + $0x2cc] ss:$16 sps:$4 sm:$0xff]  }
  0xa8   :  { %1593 = vmatprep.subr.bf16.mxu0 %v3068_v32  ;;  %v3161_v32 = vld [vmem:[#allocation5 + $0x6c4] ss:$16 sps:$4 sm:$0xff]  }
  0xaa   :  { %1680 = vmatpush1.bf16.msra.mxu1 %v3069_v36  ;;  %v3162_v36 = vld [vmem:[#allocation5 + $0x2c8] ss:$16 sps:$4 sm:$0xff]  }
  0xab   :  { %1594 = vmatpush1.bf16.msra.mxu0 %v3066_v35  ;;  %1681 = vmatprep.subr.bf16.mxu1 %v3077_v38  ;;  %v3159_v35 = vld [vmem:[#allocation5 + $0x6c0] ss:$16 sps:$4 sm:$0xff]   ;;  %v3170_v38 = vld [vmem:[#allocation5 + $0x2ec] ss:$16 sps:$4 sm:$0xff]  }
  0xac   :  { %1595 = vmatprep.subr.bf16.mxu0 %v3074_v37  ;;  %v3167_v37 = vld [vmem:[#allocation5 + $0x6e4] ss:$16 sps:$4 sm:$0xff]  }
  0xae   :  { %1682 = vmatpush1.bf16.msra.mxu1 %v3075_v40  ;;  %v3168_v40 = vld [vmem:[#allocation5 + $0x2e8] ss:$16 sps:$4 sm:$0xff]  }
  0xaf   :  { %1596 = vmatpush1.bf16.msra.mxu0 %v3072_v39  ;;  %1683 = vmatprep.subr.bf16.mxu1 %v3083_v42  ;;  %v3165_v39 = vld [vmem:[#allocation5 + $0x6e0] ss:$16 sps:$4 sm:$0xff]  }
  0xb0   :  { %1597 = vmatprep.subr.bf16.mxu0 %v3080_v41  ;;  %v3174_v41 = vld [vmem:[#allocation5 + $0x30c] ss:$16 sps:$4 sm:$0xff]  }
  0xb1   :  { %v3621_v42 = vld [vmem:[#allocation2 + $0x18] ss:$28 sps:$4 sm:$0xff]  }
  0xb2   :  { %1684 = vmatpush1.bf16.msra.mxu1 %v3081_v44  ;;  %v3177_v44 = vld [vmem:[#allocation5 + $0x32c] ss:$16 sps:$4 sm:$0xff]  }
  0xb3   :  { %1598 = vmatpush1.bf16.msra.mxu0 %v3078_v43  ;;  %1685 = vmatprep.subr.bf16.mxu1 %v3089_v46  ;;  %v3172_v43 = vld [vmem:[#allocation5 + $0x308] ss:$16 sps:$4 sm:$0xff]   ;;  %v3270_v46 = vld [vmem:[#allocation7 + $0x4] ss:$8 sps:$4 sm:$0xff]  }
  0xb4   :  { %1599 = vmatprep.subr.bf16.mxu0 %v3086_v45  ;;  %v3268_v45 = vld [vmem:[#allocation7] ss:$8 sps:$4 sm:$0xff]  }
  0xb6   :  { %1686 = vmatpush1.bf16.msra.mxu1 %v3087_v48  ;;  %v3273_v48 = vld [vmem:[#allocation7 + $0x14] ss:$8 sps:$4 sm:$0xff]  }
  0xb7   :  { %1600 = vmatpush1.bf16.msra.mxu0 %v3084_v47  ;;  %1687 = vmatprep.subr.bf16.mxu1 %v3095_v50  ;;  %v3175_v47 = vld [vmem:[#allocation5 + $0x328] ss:$16 sps:$4 sm:$0xff]  }
  0xb8   :  { %1601 = vmatprep.subr.bf16.mxu0 %v3092_v49  ;;  %v3180_v49 = vld [vmem:[#allocation5 + $0x34c] ss:$16 sps:$4 sm:$0xff]   ;;  %v3271_v50 = vld [vmem:[#allocation7 + $0x10] ss:$8 sps:$4 sm:$0xff]  }
  0xba   :  { %1688 = vmatpush1.bf16.msra.mxu1 %v3093_v53  ;;  %v3178_v53 = vld [vmem:[#allocation5 + $0x348] ss:$16 sps:$4 sm:$0xff]  }
  0xbb   :  { %1602 = vmatpush1.bf16.msra.mxu0 %v3090_v52  ;;  %1689 = vmatprep.subr.bf16.mxu1 %v3101_v55  ;;  %v3276_v52 = vld [vmem:[#allocation7 + $0x24] ss:$8 sps:$4 sm:$0xff]   ;;  %v3181_v55 = vld [vmem:[#allocation5 + $0x368] ss:$16 sps:$4 sm:$0xff]  }
  0xbc   :  { %1603 = vmatprep.subr.bf16.mxu0 %v3098_v54  ;;  %v3183_v54 = vld [vmem:[#allocation5 + $0x36c] ss:$16 sps:$4 sm:$0xff]  }
  0xbe   :  { %1690 = vmatpush1.bf16.msra.mxu1 %v3099_v57  ;;  %v3186_v57 = vld [vmem:[#allocation5 + $0x38c] ss:$16 sps:$4 sm:$0xff]  }
  0xbf   :  { %1604 = vmatpush1.bf16.msra.mxu0 %v3096_v56  ;;  %1691 = vmatprep.subr.bf16.mxu1 %v3107_v59  ;;  %v3274_v56 = vld [vmem:[#allocation7 + $0x20] ss:$8 sps:$4 sm:$0xff]   ;;  %v3277_v59 = vld [vmem:[#allocation7 + $0x30] ss:$8 sps:$4 sm:$0xff]  }
  0xc0   :  { %1605 = vmatprep.subr.bf16.mxu0 %v3104_v58  ;;  %v3279_v58 = vld [vmem:[#allocation7 + $0x34] ss:$8 sps:$4 sm:$0xff]  }
  0xc2   :  { %1692 = vmatpush1.bf16.msra.mxu1 %v3105_v61  ;;  %v3184_v61 = vld [vmem:[#allocation5 + $0x388] ss:$16 sps:$4 sm:$0xff]  }
  0xc3   :  { %1606 = vmatpush1.bf16.msra.mxu0 %v3102_v60  ;;  %1693 = vmatprep.subr.bf16.mxu1 %v3113_v63  ;;  %v3282_v60 = vld [vmem:[#allocation7 + $0x44] ss:$8 sps:$4 sm:$0xff]   ;;  %v3280_v63 = vld [vmem:[#allocation7 + $0x40] ss:$8 sps:$4 sm:$0xff]  }
  0xc4   :  { %1607 = vmatprep.subr.bf16.mxu0 %v3110_v62  ;;  %v3189_v62 = vld [vmem:[#allocation5 + $0x3ac] ss:$16 sps:$4 sm:$0xff]  }
  0xc6   :  { %1694 = vmatpush1.bf16.msra.mxu1 %v3111_v1  ;;  %v3187_v1 = vld [vmem:[#allocation5 + $0x3a8] ss:$16 sps:$4 sm:$0xff]  }
  0xc7   :  { %1608 = vmatpush1.bf16.msra.mxu0 %v3108_v0  ;;  %1695 = vmatprep.subr.bf16.mxu1 %v3119_v3  ;;  %v3285_v0 = vld [vmem:[#allocation7 + $0x54] ss:$8 sps:$4 sm:$0xff]   ;;  %v3283_v3 = vld [vmem:[#allocation7 + $0x50] ss:$8 sps:$4 sm:$0xff]  }
  0xc8   :  { %1609 = vmatprep.subr.bf16.mxu0 %v3116_v2  ;;  %v3192_v2 = vld [vmem:[#allocation5 + $0x3cc] ss:$16 sps:$4 sm:$0xff]  }
  0xca   :  { %1696 = vmatpush1.bf16.msra.mxu1 %v3117_v7  ;;  %v3190_v7 = vld [vmem:[#allocation5 + $0x3c8] ss:$16 sps:$4 sm:$0xff]  }
  0xcb   :  { %1610 = vmatpush1.bf16.msra.mxu0 %v3114_v6  ;;  %1708 = vmatprep.subr.bf16.mxu1 %v3128_v9  ;;  %v3288_v6 = vld [vmem:[#allocation7 + $0x64] ss:$8 sps:$4 sm:$0xff]   ;;  %v3286_v9 = vld [vmem:[#allocation7 + $0x60] ss:$8 sps:$4 sm:$0xff]  }
  0xcc   :  { %1622 = vmatprep.subr.bf16.mxu0 %v3125_v8  ;;  %v3195_v8 = vld [vmem:[#allocation5 + $0x3ec] ss:$16 sps:$4 sm:$0xff]  }
  0xcd   :  { %1698 = vmatmul.mubr.bf16.vlgmr.msra.gmra.mrb[4].mxu1 %v3606_v4  ;;  %v3146_v4 = vld [vmem:[#allocation5 + $0x26c] ss:$16 sps:$4 sm:$0xff]  }
  0xce   :  { %1612 = vmatmul.mubr.bf16.vlgmr.msra.gmra.mrb[0].mxu0 %v3615_v10  ;;  %1709 = vmatpush1.bf16.msra.mxu1 %v3126_v12  ;;  %v3193_v12 = vld [vmem:[#allocation5 + $0x3e8] ss:$16 sps:$4 sm:$0xff]  }
  0xcf   :  { %1623 = vmatpush1.bf16.msra.mxu0 %v3123_v11  ;;  %1710 = vmatprep.subr.bf16.mxu1 %v3134_v14  ;;  %v3291_v11 = vld [vmem:[#allocation7 + $0x74] ss:$8 sps:$4 sm:$0xff]   ;;  %v3289_v14 = vld [vmem:[#allocation7 + $0x70] ss:$8 sps:$4 sm:$0xff]  }
  0xd0   :  { %1624 = vmatprep.subr.bf16.mxu0 %v3131_v13  ;;  %1654 = vmatprep.mubr.bf16.mxu0 %v3510_v19  ;;  %v3198_v13 = vld [vmem:[#allocation5 + $0x40c] ss:$16 sps:$4 sm:$0xff]  }
  0xd1   :  { %1740 = vmatprep.mubr.bf16.mxu1 %v3603_v51  ;;  %v3150_v51 = vld [vmem:[#allocation5 + $0x288] ss:$16 sps:$4 sm:$0xff]  }
  0xd2   :  { %1711 = vmatpush1.bf16.msra.mxu1 %v3132_v16  ;;  %v3196_v16 = vld [vmem:[#allocation5 + $0x408] ss:$16 sps:$4 sm:$0xff]  }
  0xd3   :  { %1625 = vmatpush1.bf16.msra.mxu0 %v3129_v15  ;;  %1712 = vmatprep.subr.bf16.mxu1 %v3140_v18  ;;  %v3294_v15 = vld [vmem:[#allocation7 + $0x84] ss:$8 sps:$4 sm:$0xff]   ;;  %v3292_v18 = vld [vmem:[#allocation7 + $0x80] ss:$8 sps:$4 sm:$0xff]  }
  0xd4   :  { %1626 = vmatprep.subr.bf16.mxu0 %v3137_v17  ;;  %v3201_v17 = vld [vmem:[#allocation5 + $0x42c] ss:$16 sps:$4 sm:$0xff]  }
  0xd6   :  { %1713 = vmatpush1.bf16.msra.mxu1 %v3138_v21  ;;  %v3199_v21 = vld [vmem:[#allocation5 + $0x428] ss:$16 sps:$4 sm:$0xff]  }
  0xd7   :  { %1627 = vmatpush1.bf16.msra.mxu0 %v3135_v20  ;;  %1714 = vmatprep.subr.bf16.mxu1 %v3146_v4  ;;  %v3297_v20 = vld [vmem:[#allocation7 + $0x94] ss:$8 sps:$4 sm:$0xff]   ;;  %v3295_v4 = vld [vmem:[#allocation7 + $0x90] ss:$8 sps:$4 sm:$0xff]  }
  0xd8   :  { %1628 = vmatprep.subr.bf16.mxu0 %v3143_v22  ;;  %v3204_v22 = vld [vmem:[#allocation5 + $0x44c] ss:$16 sps:$4 sm:$0xff]  }
  0xda   :  { %1715 = vmatpush1.bf16.msra.mxu1 %v3144_v24  ;;  %v3202_v24 = vld [vmem:[#allocation5 + $0x448] ss:$16 sps:$4 sm:$0xff]  }
  0xdb   :  { %1629 = vmatpush1.bf16.msra.mxu0 %v3141_v23  ;;  %1716 = vmatprep.subr.bf16.mxu1 %v3152_v26  ;;  %v3300_v23 = vld [vmem:[#allocation7 + $0xa4] ss:$8 sps:$4 sm:$0xff]   ;;  %v3298_v26 = vld [vmem:[#allocation7 + $0xa0] ss:$8 sps:$4 sm:$0xff]  }
  0xdc   :  { %1630 = vmatprep.subr.bf16.mxu0 %v3149_v25  ;;  %v3207_v25 = vld [vmem:[#allocation5 + $0x46c] ss:$16 sps:$4 sm:$0xff]  }
  0xde   :  { %1717 = vmatpush1.bf16.msra.mxu1 %v3150_v51  ;;  %v3210_v51 = vld [vmem:[#allocation5 + $0x48c] ss:$16 sps:$4 sm:$0xff]  }
  0xdf   :  { %1631 = vmatpush1.bf16.msra.mxu0 %v3147_v27  ;;  %1718 = vmatprep.subr.bf16.mxu1 %v3158_v29  ;;  %v3303_v27 = vld [vmem:[#allocation7 + $0xb4] ss:$8 sps:$4 sm:$0xff]   ;;  %v3208_v29 = vld [vmem:[#allocation5 + $0x488] ss:$16 sps:$4 sm:$0xff]  }
  0xe0   :  { %1632 = vmatprep.subr.bf16.mxu0 %v3155_v28  ;;  %v3306_v28 = vld [vmem:[#allocation7 + $0xc4] ss:$8 sps:$4 sm:$0xff]  }
  0xe2   :  { %1719 = vmatpush1.bf16.msra.mxu1 %v3156_v31  ;;  %v3304_v31 = vld [vmem:[#allocation7 + $0xc0] ss:$8 sps:$4 sm:$0xff]  }
  0xe3   :  { %1633 = vmatpush1.bf16.msra.mxu0 %v3153_v30  ;;  %1720 = vmatprep.subr.bf16.mxu1 %v3164_v33  ;;  %v3213_v30 = vld [vmem:[#allocation5 + $0x4ac] ss:$16 sps:$4 sm:$0xff]   ;;  %v3211_v33 = vld [vmem:[#allocation5 + $0x4a8] ss:$16 sps:$4 sm:$0xff]  }
  0xe4   :  { %1634 = vmatprep.subr.bf16.mxu0 %v3161_v32  ;;  %v3309_v32 = vld [vmem:[#allocation7 + $0xd4] ss:$8 sps:$4 sm:$0xff]  }
  0xe6   :  { %1721 = vmatpush1.bf16.msra.mxu1 %v3162_v36  ;;  %v3307_v36 = vld [vmem:[#allocation7 + $0xd0] ss:$8 sps:$4 sm:$0xff]  }
  0xe7   :  { %1635 = vmatpush1.bf16.msra.mxu0 %v3159_v35  ;;  %1722 = vmatprep.subr.bf16.mxu1 %v3170_v38  ;;  %v3216_v35 = vld [vmem:[#allocation5 + $0x4cc] ss:$16 sps:$4 sm:$0xff]  }
  0xe8   :  { %1636 = vmatprep.subr.bf16.mxu0 %v3167_v37  ;;  %v3214_v37 = vld [vmem:[#allocation5 + $0x4c8] ss:$16 sps:$4 sm:$0xff]   ;;  %v3219_v38 = vld [vmem:[#allocation5 + $0x4ec] ss:$16 sps:$4 sm:$0xff]  }
  0xea   :  { %1723 = vmatpush1.bf16.msra.mxu1 %v3168_v40  ;;  %v3222_v40 = vld [vmem:[#allocation5 + $0x50c] ss:$16 sps:$4 sm:$0xff]  }
  0xeb   :  { %1637 = vmatpush1.bf16.msra.mxu0 %v3165_v39  ;;  %1724 = vmatprep.subr.bf16.mxu1 %v3174_v41  ;;  %v3217_v39 = vld [vmem:[#allocation5 + $0x4e8] ss:$16 sps:$4 sm:$0xff]  }
  0xec   :  { %2245 = vmatprep.subr.bf16.mxu0 %v3270_v46  ;;  %v3220_v41 = vld [vmem:[#allocation5 + $0x508] ss:$16 sps:$4 sm:$0xff]  }
  0xed   :  { %v3226_v46 = vld [vmem:[#allocation5 + $0x548] ss:$16 sps:$4 sm:$0xff]  }
  0xee   :  { %1655 = vmatmul.mubr.bf16.vlgmr.msra.gmra.mrb[0].mxu0 %v3621_v42  ;;  %1725 = vmatpush1.bf16.msra.mxu1 %v3172_v43  ;;  %v3225_v43 = vld [vmem:[#allocation5 + $0x52c] ss:$16 sps:$4 sm:$0xff]  }
  0xef   :  { %1726 = vmatprep.subr.bf16.mxu1 %v3177_v44  ;;  %2246 = vmatpush1.bf16.msra.mxu0 %v3268_v45  ;;  %v3223_v44 = vld [vmem:[#allocation5 + $0x528] ss:$16 sps:$4 sm:$0xff]   ;;  %v3228_v45 = vld [vmem:[#allocation5 + $0x54c] ss:$16 sps:$4 sm:$0xff]  }
  0xf0   :  { %2247 = vmatprep.subr.bf16.mxu0 %v3273_v48  ;;  %v3229_v48 = vld [vmem:[#allocation5 + $0x568] ss:$16 sps:$4 sm:$0xff]  }
  0xf2   :  { %1727 = vmatpush1.bf16.msra.mxu1 %v3175_v47  ;;  %v3231_v47 = vld [vmem:[#allocation5 + $0x56c] ss:$16 sps:$4 sm:$0xff]  }
  0xf3   :  { %1728 = vmatprep.subr.bf16.mxu1 %v3180_v49  ;;  %2248 = vmatpush1.bf16.msra.mxu0 %v3271_v50  ;;  %v3234_v49 = vld [vmem:[#allocation5 + $0x58c] ss:$16 sps:$4 sm:$0xff]   ;;  %v3232_v50 = vld [vmem:[#allocation5 + $0x588] ss:$16 sps:$4 sm:$0xff]  }
  0xf4   :  { %2249 = vmatprep.subr.bf16.mxu0 %v3276_v52  ;;  %v3237_v52 = vld [vmem:[#allocation5 + $0x5ac] ss:$16 sps:$4 sm:$0xff]  }
  0xf6   :  { %1729 = vmatpush1.bf16.msra.mxu1 %v3178_v53  ;;  %v3235_v53 = vld [vmem:[#allocation5 + $0x5a8] ss:$16 sps:$4 sm:$0xff]  }
  0xf7   :  { %1730 = vmatprep.subr.bf16.mxu1 %v3183_v54  ;;  %2250 = vmatpush1.bf16.msra.mxu0 %v3274_v56  ;;  %v3240_v54 = vld [vmem:[#allocation5 + $0x5cc] ss:$16 sps:$4 sm:$0xff]   ;;  %v3238_v56 = vld [vmem:[#allocation5 + $0x5c8] ss:$16 sps:$4 sm:$0xff]  }
  0xf8   :  { %2251 = vmatprep.subr.bf16.mxu0 %v3279_v58  ;;  %v3243_v58 = vld [vmem:[#allocation5 + $0x5ec] ss:$16 sps:$4 sm:$0xff]  }
  0xfa   :  { %1731 = vmatpush1.bf16.msra.mxu1 %v3181_v55  ;;  %v3312_v55 = vld [vmem:[#allocation7 + $0xe4] ss:$8 sps:$4 sm:$0xff]  }
  0xfb   :  { %1732 = vmatprep.subr.bf16.mxu1 %v3186_v57  ;;  %2252 = vmatpush1.bf16.msra.mxu0 %v3277_v59  ;;  %v3310_v57 = vld [vmem:[#allocation7 + $0xe0] ss:$8 sps:$4 sm:$0xff]   ;;  %v3315_v59 = vld [vmem:[#allocation7 + $0xf4] ss:$8 sps:$4 sm:$0xff]  }
  0xfc   :  { %2253 = vmatprep.subr.bf16.mxu0 %v3282_v60  ;;  %v3241_v60 = vld [vmem:[#allocation5 + $0x5e8] ss:$16 sps:$4 sm:$0xff]  }
  0xfe   :  { %1733 = vmatpush1.bf16.msra.mxu1 %v3184_v61  ;;  %v3313_v61 = vld [vmem:[#allocation7 + $0xf0] ss:$8 sps:$4 sm:$0xff]  }
  0xff   :  { %1734 = vmatprep.subr.bf16.mxu1 %v3189_v62  ;;  %2254 = vmatpush1.bf16.msra.mxu0 %v3280_v63  ;;  %v3246_v62 = vld [vmem:[#allocation5 + $0x60c] ss:$16 sps:$4 sm:$0xff]   ;;  %v3244_v63 = vld [vmem:[#allocation5 + $0x608] ss:$16 sps:$4 sm:$0xff]  }
 0x100   :  { %2255 = vmatprep.subr.bf16.mxu0 %v3285_v0  ;;  %v3249_v0 = vld [vmem:[#allocation5 + $0x62c] ss:$16 sps:$4 sm:$0xff]  }
 0x102   :  { %1735 = vmatpush1.bf16.msra.mxu1 %v3187_v1  ;;  %v3318_v1 = vld [vmem:[#allocation7 + $0x104] ss:$8 sps:$4 sm:$0xff]  }
 0x103   :  { %1736 = vmatprep.subr.bf16.mxu1 %v3192_v2  ;;  %2256 = vmatpush1.bf16.msra.mxu0 %v3283_v3  ;;  %v3247_v2 = vld [vmem:[#allocation5 + $0x628] ss:$16 sps:$4 sm:$0xff]   ;;  %v3252_v3 = vld [vmem:[#allocation5 + $0x64c] ss:$16 sps:$4 sm:$0xff]  }
 0x104   :  { %2257 = vmatprep.subr.bf16.mxu0 %v3288_v6  ;;  %v3250_v6 = vld [vmem:[#allocation5 + $0x648] ss:$16 sps:$4 sm:$0xff]  }
 0x106   :  { %1737 = vmatpush1.bf16.msra.mxu1 %v3190_v7  ;;  %v3255_v7 = vld [vmem:[#allocation5 + $0x66c] ss:$16 sps:$4 sm:$0xff]  }
 0x107   :  { %1738 = vmatprep.subr.bf16.mxu1 %v3195_v8  ;;  %2258 = vmatpush1.bf16.msra.mxu0 %v3286_v9  ;;  %v3253_v8 = vld [vmem:[#allocation5 + $0x668] ss:$16 sps:$4 sm:$0xff]   ;;  %v3258_v9 = vld [vmem:[#allocation5 + $0x68c] ss:$16 sps:$4 sm:$0xff]  }
 0x108   :  { %2259 = vmatprep.subr.bf16.mxu0 %v3291_v11  ;;  %v3256_v11 = vld [vmem:[#allocation5 + $0x688] ss:$16 sps:$4 sm:$0xff]  }
 0x10a   :  { %1739 = vmatpush1.bf16.msra.mxu1 %v3193_v12  ;;  %v3261_v12 = vld [vmem:[#allocation5 + $0x6ac] ss:$16 sps:$4 sm:$0xff]  }
 0x10b   :  { %1751 = vmatprep.subr.bf16.mxu1 %v3198_v13  ;;  %2260 = vmatpush1.bf16.msra.mxu0 %v3289_v14  ;;  %v3264_v13 = vld [vmem:[#allocation5 + $0x6cc] ss:$16 sps:$4 sm:$0xff]  }
 0x10c   :  { %2261 = vmatprep.subr.bf16.mxu0 %v3294_v15 }
 0x10d   :  { %1741 = vmatmul.mubr.bf16.vlgmr.msra.gmra.mrb[4].mxu1 %v3608_v5  ;;  %v3205_v5 = vld [vmem:[#allocation5 + $0x468] ss:$16 sps:$4 sm:$0xff]  }
 0x10e   :  { %1752 = vmatpush1.bf16.msra.mxu1 %v3196_v16  ;;  %1783 = vmatprep.mubr.bf16.mxu1 %v3612_v34  ;;  %v3301_v34 = vld [vmem:[#allocation7 + $0xb0] ss:$8 sps:$4 sm:$0xff]  }
 0x10f   :  { %1753 = vmatprep.subr.bf16.mxu1 %v3201_v17  ;;  %2262 = vmatpush1.bf16.msra.mxu0 %v3292_v18  ;;  %v3262_v16 = vld [vmem:[#allocation5 + $0x6c8] ss:$16 sps:$4 sm:$0xff]   ;;  %v3267_v18 = vld [vmem:[#allocation5 + $0x6ec] ss:$16 sps:$4 sm:$0xff]  }
 0x110   :  { %2263 = vmatprep.subr.bf16.mxu0 %v3297_v20  ;;  %v3265_v20 = vld [vmem:[#allocation5 + $0x6e8] ss:$16 sps:$4 sm:$0xff]  }
 0x112   :  { %1754 = vmatpush1.bf16.msra.mxu1 %v3199_v21  ;;  %v317_v21 = vlaneseq }
 0x113   :  { %1755 = vmatprep.subr.bf16.mxu1 %v3204_v22  ;;  %2264 = vmatpush1.bf16.msra.mxu0 %v3295_v4 }
 0x114   :  { %2265 = vmatprep.subr.bf16.mxu0 %v3300_v23  ;;  %v3629_v22 = vshrl.u32 %v317_v21, 7  ;;  %v3635_v23 = vld [vmem:[%s3675_s2] sm:$0xf] }
 0x115   :  { %v3358_v21 = vld [vmem:[#allocation7 + $0x1e0] ss:$8 sps:$4 sm:$0xff]  }
 0x116   :  { %1756 = vmatpush1.bf16.msra.mxu1 %v3202_v24  ;;  %v319_v4 = vsub.s32 0, %v3629_v22  ;;  %v323_v24 = vsub.s32 1, %v3629_v22 }
 0x117   :  { %1757 = vmatprep.subr.bf16.mxu1 %v3207_v25  ;;  %2266 = vmatpush1.bf16.msra.mxu0 %v3298_v26 }
 0x118   :  { %2267 = vmatprep.subr.bf16.mxu0 %v3303_v27  ;;  %v320_v25 = vrot.slane %v3635_v23, %v319_v4 }
 0x11a   :  { %1758 = vmatpush1.bf16.msra.mxu1 %v3205_v5 }
 0x11b   :  { %1759 = vmatprep.subr.bf16.mxu1 %v3210_v51  ;;  %2268 = vmatpush1.bf16.msra.mxu0 %v3301_v34 }
 0x11c   :  { %2269 = vmatprep.subr.bf16.mxu0 %v3306_v28 }
 0x11e   :  { %1760 = vmatpush1.bf16.msra.mxu1 %v3208_v29 }
 0x11f   :  { %1761 = vmatprep.subr.bf16.mxu1 %v3213_v30  ;;  %2270 = vmatpush1.bf16.msra.mxu0 %v3304_v31 }
 0x120   :  { %2271 = vmatprep.subr.bf16.mxu0 %v3309_v32 }
 0x122   :  { %1762 = vmatpush1.bf16.msra.mxu1 %v3211_v33 }
 0x123   :  { %1763 = vmatprep.subr.bf16.mxu1 %v3216_v35  ;;  %2272 = vmatpush1.bf16.msra.mxu0 %v3307_v36 }
 0x124   :  { %2273 = vmatprep.subr.bf16.mxu0 %v3312_v55  ;;  %v3369_v55 = vld [vmem:[#allocation8 + $0x10] sm:$0xff]  }
 0x126   :  { %1764 = vmatpush1.bf16.msra.mxu1 %v3214_v37 }
 0x127   :  { %1765 = vmatprep.subr.bf16.mxu1 %v3219_v38  ;;  %2274 = vmatpush1.bf16.msra.mxu0 %v3310_v57  ;;  %v3325_v57 = vld [vmem:[#allocation7 + $0x130] ss:$8 sps:$4 sm:$0xff]  }
 0x128   :  { %2275 = vmatprep.subr.bf16.mxu0 %v3315_v59  ;;  %v3371_v59 = vld [vmem:[#allocation8 + $0x18] sm:$0xff]  }
 0x12a   :  { %1766 = vmatpush1.bf16.msra.mxu1 %v3217_v39 }
 0x12b   :  { %1767 = vmatprep.subr.bf16.mxu1 %v3222_v40  ;;  %2276 = vmatpush1.bf16.msra.mxu0 %v3313_v61  ;;  %v3328_v61 = vld [vmem:[#allocation7 + $0x140] ss:$8 sps:$4 sm:$0xff]  }
 0x12c   :  { %2288 = vmatprep.subr.bf16.mxu0 %v3318_v1  ;;  %v3331_v1 = vld [vmem:[#allocation7 + $0x150] ss:$8 sps:$4 sm:$0xff]  }
 0x12e   :  { %1768 = vmatpush1.bf16.msra.mxu1 %v3220_v41 }
 0x12f   :  { %1769 = vmatprep.subr.bf16.mxu1 %v3225_v43  ;;  %v3316_v43 = vld [vmem:[#allocation7 + $0x100] ss:$8 sps:$4 sm:$0xff]  }
 0x132   :  { %1770 = vmatpush1.bf16.msra.mxu1 %v3223_v44  ;;  %v3321_v44 = vld [vmem:[#allocation7 + $0x114] ss:$8 sps:$4 sm:$0xff]  }
 0x133   :  { %1771 = vmatprep.subr.bf16.mxu1 %v3228_v45  ;;  %v3364_v45 = vld [vmem:[#allocation8 + $0x40] sm:$0xff]  }
 0x136   :  { %1772 = vmatpush1.bf16.msra.mxu1 %v3226_v46  ;;  %v3365_v46 = vld [vmem:[#allocation8] sm:$0xff]  }
 0x137   :  { %1773 = vmatprep.subr.bf16.mxu1 %v3231_v47  ;;  %v3366_v47 = vld [vmem:[#allocation8 + $0x48] sm:$0xff]  }
 0x13a   :  { %1774 = vmatpush1.bf16.msra.mxu1 %v3229_v48  ;;  %v3319_v48 = vld [vmem:[#allocation7 + $0x110] ss:$8 sps:$4 sm:$0xff]  }
 0x13b   :  { %1775 = vmatprep.subr.bf16.mxu1 %v3234_v49  ;;  %v3324_v49 = vld [vmem:[#allocation7 + $0x124] ss:$8 sps:$4 sm:$0xff]  }
 0x13e   :  { %1776 = vmatpush1.bf16.msra.mxu1 %v3232_v50  ;;  %v3367_v50 = vld [vmem:[#allocation8 + $0x8] sm:$0xff]  }
 0x13f   :  { %1777 = vmatprep.subr.bf16.mxu1 %v3237_v52  ;;  %v3368_v52 = vld [vmem:[#allocation8 + $0x50] sm:$0xff]  }
 0x142   :  { %1778 = vmatpush1.bf16.msra.mxu1 %v3235_v53  ;;  %v3322_v53 = vld [vmem:[#allocation7 + $0x120] ss:$8 sps:$4 sm:$0xff]  }
 0x143   :  { %1779 = vmatprep.subr.bf16.mxu1 %v3240_v54  ;;  %v3327_v54 = vld [vmem:[#allocation7 + $0x134] ss:$8 sps:$4 sm:$0xff]  }
 0x146   :  { %1780 = vmatpush1.bf16.msra.mxu1 %v3238_v56  ;;  %v3370_v56 = vld [vmem:[#allocation8 + $0x58] sm:$0xff]  }
 0x147   :  { %1781 = vmatprep.subr.bf16.mxu1 %v3243_v58  ;;  %v3330_v58 = vld [vmem:[#allocation7 + $0x144] ss:$8 sps:$4 sm:$0xff]  }
 0x14a   :  { %1782 = vmatpush1.bf16.msra.mxu1 %v3241_v60  ;;  %v3372_v60 = vld [vmem:[#allocation8 + $0x60] sm:$0xff]  }
 0x14b   :  { %1794 = vmatprep.subr.bf16.mxu1 %v3246_v62  ;;  %v3333_v62 = vld [vmem:[#allocation7 + $0x154] ss:$8 sps:$4 sm:$0xff]  }
 0x14d   :  { %1784 = vmatmul.mubr.bf16.vlgmr.msra.gmra.mrb[4].mxu1 %v3615_v10  ;;  %v3259_v10 = vld [vmem:[#allocation5 + $0x6a8] ss:$16 sps:$4 sm:$0xff]  }
 0x14e   :  { %1795 = vmatpush1.bf16.msra.mxu1 %v3244_v63  ;;  %1826 = vmatprep.mubr.bf16.mxu1 %v3510_v19  ;;  %v3373_v63 = vld [vmem:[#allocation8 + $0x20] sm:$0xff]  }
 0x14f   :  { %1796 = vmatprep.subr.bf16.mxu1 %v3249_v0  ;;  %v3374_v0 = vld [vmem:[#allocation8 + $0x68] sm:$0xff]  }
 0x152   :  { %1797 = vmatpush1.bf16.msra.mxu1 %v3247_v2  ;;  %v3336_v2 = vld [vmem:[#allocation7 + $0x164] ss:$8 sps:$4 sm:$0xff]  }
 0x153   :  { %1798 = vmatprep.subr.bf16.mxu1 %v3252_v3  ;;  %v3334_v3 = vld [vmem:[#allocation7 + $0x160] ss:$8 sps:$4 sm:$0xff]  }
 0x156   :  { %1799 = vmatpush1.bf16.msra.mxu1 %v3250_v6  ;;  %v3339_v6 = vld [vmem:[#allocation7 + $0x174] ss:$8 sps:$4 sm:$0xff]  }
 0x157   :  { %1800 = vmatprep.subr.bf16.mxu1 %v3255_v7  ;;  %v3337_v7 = vld [vmem:[#allocation7 + $0x170] ss:$8 sps:$4 sm:$0xff]  }
 0x15a   :  { %1801 = vmatpush1.bf16.msra.mxu1 %v3253_v8  ;;  %v3342_v8 = vld [vmem:[#allocation7 + $0x184] ss:$8 sps:$4 sm:$0xff]  }
 0x15b   :  { %1802 = vmatprep.subr.bf16.mxu1 %v3258_v9  ;;  %v3340_v9 = vld [vmem:[#allocation7 + $0x180] ss:$8 sps:$4 sm:$0xff]  }
 0x15e   :  { %1803 = vmatpush1.bf16.msra.mxu1 %v3256_v11  ;;  %v3345_v11 = vld [vmem:[#allocation7 + $0x194] ss:$8 sps:$4 sm:$0xff]  }
 0x15f   :  { %1804 = vmatprep.subr.bf16.mxu1 %v3261_v12  ;;  %v3343_v12 = vld [vmem:[#allocation7 + $0x190] ss:$8 sps:$4 sm:$0xff]  }
 0x160   :  { %v1527_v14 = vpop.f32.mrb[0].mxu1 }
 0x161   :  { %v1529_v19 = vpop.f32.mrb[1].mxu1  ;;  %v1528_v26 = vadd.f32 %v1527_v14, %v320_v25  ;;  %v3351_v14 = vld [vmem:[#allocation7 + $0x1b4] ss:$8 sps:$4 sm:$0xff]  }
 0x162   :  { %v1531_v15 = vpop.f32.mrb[2].mxu1  ;;  %1805 = vmatpush1.bf16.msra.mxu1 %v3259_v10  ;;  %v3348_v10 = vld [vmem:[#allocation7 + $0x1a4] ss:$8 sps:$4 sm:$0xff]  }
 0x163   :  { %v1533_v17 = vpop.f32.mrb[3].mxu1  ;;  %1806 = vmatprep.subr.bf16.mxu1 %v3264_v13  ;;  %v1532_v51 = vadd.f32 %v1531_v15, %v320_v25  ;;  %v3346_v13 = vld [vmem:[#allocation7 + $0x1a0] ss:$8 sps:$4 sm:$0xff]   ;;  %v3354_v15 = vld [vmem:[#allocation7 + $0x1c4] ss:$8 sps:$4 sm:$0xff]  }
 0x164   :  { %v3363_v25 = vld [vmem:[#allocation7 + $0x1f4] ss:$8 sps:$4 sm:$0xff]  }
 0x166   :  { %1807 = vmatpush1.bf16.msra.mxu1 %v3262_v16  ;;  %v3352_v16 = vld [vmem:[#allocation7 + $0x1c0] ss:$8 sps:$4 sm:$0xff]  }
 0x167   :  { %1808 = vmatprep.subr.bf16.mxu1 %v3267_v18  ;;  %v3355_v18 = vld [vmem:[#allocation7 + $0x1d0] ss:$8 sps:$4 sm:$0xff]  }
 0x16a   :  { %1809 = vmatpush1.bf16.msra.mxu1 %v3265_v20  ;;  %v3360_v20 = vld [vmem:[#allocation7 + $0x1e4] ss:$8 sps:$4 sm:$0xff]  }
 0x16b   :  { %2846 = vmatprep.subr.bf16.mxu1 %v3364_v45  ;;  %v3378_v45 = vld [vmem:[#allocation8 + $0x78] sm:$0xff]  }
 0x16d   :  { %1827 = vmatmul.mubr.bf16.vlgmr.msra.gmra.mrb[4].mxu1 %v3621_v42  ;;  %v324_v42 = vrot.slane %v3635_v23, %v323_v24 }
 0x16e   :  { %2847 = vmatpush3.bf16.msra.mxu1 %v3365_v46  ;;  %v3379_v46 = vld [vmem:[#allocation8 + $0x38] sm:$0xff]  }
 0x16f   :  { %v1530_v27 = vadd.f32 %v1529_v19, %v324_v42  ;;  %v1534_v29 = vadd.f32 %v1533_v17, %v324_v42  ;;  %2848 = vmatprep.subr.bf16.mxu1 %v3366_v47  ;;  %v3349_v19 = vld [vmem:[#allocation7 + $0x1b0] ss:$8 sps:$4 sm:$0xff]   ;;  %v3357_v17 = vld [vmem:[#allocation7 + $0x1d4] ss:$8 sps:$4 sm:$0xff]   ;;  %v1913_v47 = vld [vmem:[%s3677_s4] sm:$0x3] }
 0x170   :  { %v3361_v42 = vld [vmem:[#allocation7 + $0x1f0] ss:$8 sps:$4 sm:$0xff]  }
 0x172   :  { %2849 = vmatpush3.bf16.msra.mxu1 %v3367_v50 }
 0x173   :  { %2850 = vmatprep.subr.bf16.mxu1 %v3368_v52 }
 0x176   :  { %2851 = vmatpush3.bf16.msra.mxu1 %v3369_v55 }
 0x177   :  { %2852 = vmatprep.subr.bf16.mxu1 %v3370_v56 }
 0x17a   :  { %2853 = vmatpush3.bf16.msra.mxu1 %v3371_v59 }
 0x17b   :  { %2854 = vmatprep.subr.bf16.mxu1 %v3372_v60 }
 0x17e   :  { %2855 = vmatpush3.bf16.msra.mxu1 %v3373_v63 }
 0x17f   :  { %2856 = vmatprep.subr.bf16.mxu1 %v3374_v0 }
 0x1c1   :  { %v1656_v5 = vpop.f32.mrb[0].mxu0 }
 0x1c2   :  { %v2869_v34 = vadd.f32 %v1656_v5, %v1528_v26  ;;  %v1658_v28 = vpop.f32.mrb[1].mxu0  ;;  %v327_v26 = vsub.s32 2, %v3629_v22 }
 0x1c3   :  { %v2871_v30 = vadd.f32 %v1658_v28, %v1530_v27  ;;  %v1660_v31 = vpop.f32.mrb[2].mxu0  ;;  %v331_v27 = vsub.s32 3, %v3629_v22  ;;  %v2829_v22 = vld [vmem:[%s3679_s6] ss:$0 sm:$0xff] }
 0x1c4   :  { %v2873_v32 = vadd.f32 %v1660_v31, %v1532_v51  ;;  %v1662_v33 = vpop.f32.mrb[3].mxu0  ;;  %v1837_v36 = vmax.f32 %v2869_v34, 0.0  ;;  %v328_v5 = vrot.slane %v3635_v23, %v327_v26 }
 0x1c5   :  { %v2875_v35 = vadd.f32 %v1662_v33, %v1534_v29  ;;  %v1838_v38 = vmax.f32 %v2871_v30, 0.0  ;;  %v332_v51 = vrot.slane %v3635_v23, %v331_v27  ;;  %v3377_v23 = vld [vmem:[#allocation8 + $0x30] sm:$0xff]  }
 0x1c6   :  { %v1841_v37 = vmax.f32 %v2873_v32, 0.0 }
 0x1c7   :  { %v1842_v39 = vmax.f32 %v2875_v35, 0.0 }
 0x1c8   :  { %v1845_v40 = vpack.c.bf16 %v1841_v37, %v1837_v36 }
 0x1c9   :  { %v1846_v41 = vpack.c.bf16 %v1842_v39, %v1838_v38 }
 0x1cb   :  { %2277 = vmatprep.mubr.bf16.mxu0 %v1846_v41 }
 0x1cc   :  { %2278 = vmatmul.mubr.bf16.vlgmr.msra.gmra.mrb[4].mxu0 %v1845_v40 }
 0x1cd   :  { %2289 = vmatpush1.bf16.msra.mxu0 %v3316_v43  ;;  %v3375_v43 = vld [vmem:[#allocation8 + $0x28] sm:$0xff]  }
 0x1ce   :  { %2290 = vmatprep.subr.bf16.mxu0 %v3321_v44  ;;  %2857 = vmatpush3.bf16.msra.mxu1 %v3375_v43  ;;  %v3376_v44 = vld [vmem:[#allocation8 + $0x70] sm:$0xff]  }
 0x1cf   :  { %2858 = vmatprep.subr.bf16.mxu1 %v3376_v44 }
 0x1d1   :  { %2291 = vmatpush1.bf16.msra.mxu0 %v3319_v48  ;;  %v1918_v48 = vrot.slane %v1913_v47, %v319_v4 }
 0x1d2   :  { %2292 = vmatprep.subr.bf16.mxu0 %v3324_v49  ;;  %2859 = vmatpush3.bf16.msra.mxu1 %v3377_v23  ;;  %v1922_v49 = vrot.slane %v1913_v47, %v323_v24 }
 0x1d3   :  { %2860 = vmatprep.subr.bf16.mxu1 %v3378_v45 }
 0x1d5   :  { %2293 = vmatpush1.bf16.msra.mxu0 %v3322_v53 }
 0x1d6   :  { %2294 = vmatprep.subr.bf16.mxu0 %v3327_v54  ;;  %2861 = vmatpush3.bf16.msra.mxu1 %v3379_v46 }
 0x1d9   :  { %2295 = vmatpush1.bf16.msra.mxu0 %v3325_v57 }
 0x1da   :  { %2296 = vmatprep.subr.bf16.mxu0 %v3330_v58 }
 0x1dd   :  { %2297 = vmatpush1.bf16.msra.mxu0 %v3328_v61 }
 0x1de   :  { %2298 = vmatprep.subr.bf16.mxu0 %v3333_v62 }
 0x1e1   :  { %2299 = vmatpush1.bf16.msra.mxu0 %v3331_v1 }
 0x1e2   :  { %2300 = vmatprep.subr.bf16.mxu0 %v3336_v2 }
 0x1e5   :  { %2301 = vmatpush1.bf16.msra.mxu0 %v3334_v3 }
 0x1e6   :  { %2302 = vmatprep.subr.bf16.mxu0 %v3339_v6 }
 0x1e9   :  { %2303 = vmatpush1.bf16.msra.mxu0 %v3337_v7 }
 0x1ea   :  { %2304 = vmatprep.subr.bf16.mxu0 %v3342_v8 }
 0x1ed   :  { %2305 = vmatpush1.bf16.msra.mxu0 %v3340_v9 }
 0x1ee   :  { %2306 = vmatprep.subr.bf16.mxu0 %v3345_v11 }
 0x1f1   :  { %2307 = vmatpush1.bf16.msra.mxu0 %v3343_v12 }
 0x1f2   :  { %2308 = vmatprep.subr.bf16.mxu0 %v3348_v10 }
 0x1f5   :  { %2309 = vmatpush1.bf16.msra.mxu0 %v3346_v13 }
 0x1f6   :  { %2310 = vmatprep.subr.bf16.mxu0 %v3351_v14 }
 0x1f9   :  { %2311 = vmatpush1.bf16.msra.mxu0 %v3349_v19 }
 0x1fa   :  { %2312 = vmatprep.subr.bf16.mxu0 %v3354_v15 }
 0x1fd   :  { %2313 = vmatpush1.bf16.msra.mxu0 %v3352_v16 }
 0x1fe   :  { %2314 = vmatprep.subr.bf16.mxu0 %v3357_v17 }
 0x201   :  { %2315 = vmatpush1.bf16.msra.mxu0 %v3355_v18 }
 0x202   :  { %2316 = vmatprep.subr.bf16.mxu0 %v3360_v20 }
 0x205   :  { %2317 = vmatpush1.bf16.msra.mxu0 %v3358_v21 }
 0x206   :  { %2318 = vmatprep.subr.bf16.mxu0 %v3363_v25 }
 0x209   :  { %2319 = vmatpush1.bf16.msra.mxu0 %v3361_v42 }
 0x240   :  { %v1828_v34 = vpop.f32.mrb[4].mxu1 }
 0x241   :  { %v2876_v28 = vadd.f32 %v1828_v34, %v328_v5  ;;  %v1830_v29 = vpop.f32.mrb[5].mxu1 }
 0x242   :  { %v2877_v30 = vadd.f32 %v1830_v29, %v332_v51  ;;  %v1832_v31 = vpop.f32.mrb[6].mxu1 }
 0x243   :  { %v2878_v32 = vadd.f32 %v1832_v31, %v328_v5  ;;  %v1834_v33 = vpop.f32.mrb[7].mxu1  ;;  %v1839_v36 = vmax.f32 %v2876_v28, 0.0 }
 0x244   :  { %v2879_v35 = vadd.f32 %v1834_v33, %v332_v51  ;;  %v1840_v38 = vmax.f32 %v2877_v30, 0.0 }
 0x245   :  { %v1843_v37 = vmax.f32 %v2878_v32, 0.0 }
 0x246   :  { %v1844_v39 = vmax.f32 %v2879_v35, 0.0 }
 0x247   :  { %v1847_v40 = vpack.c.bf16 %v1843_v37, %v1839_v36 }
 0x248   :  { %v1848_v41 = vpack.c.bf16 %v1844_v39, %v1840_v38 }
 0x24a   :  { %2320 = vmatprep.mubr.bf16.mxu0 %v1848_v41 }
 0x24b   :  { %2321 = vmatmul.mubr.bf16.vlgmr.msra.gmra.mrb[4].mxu0 %v1847_v40 }
 0x31e   :  { %v2322_v50 = vpop.f32.mrb[4].mxu0 }
 0x31f   :  { %v2880_v52 = vadd.f32 %v2322_v50, %v1918_v48  ;;  %v2324_v53 = vpop.f32.mrb[5].mxu0 }
 0x320   :  { %v2881_v54 = vadd.f32 %v2324_v53, %v1922_v49  ;;  %v2326_v55 = vpop.f32.mrb[6].mxu0 }
 0x321   :  { %v2882_v56 = vadd.f32 %v2326_v55, %v1918_v48  ;;  %v2328_v57 = vpop.f32.mrb[7].mxu0  ;;  %v2331_v59 = vmax.f32 %v2880_v52, 0.0 }
 0x322   :  { %v2883_v58 = vadd.f32 %v2328_v57, %v1922_v49  ;;  %v2332_v61 = vmax.f32 %v2881_v54, 0.0 }
 0x323   :  { %v2333_v60 = vmax.f32 %v2882_v56, 0.0 }
 0x324   :  { %v2334_v62 = vmax.f32 %v2883_v58, 0.0 }
 0x325   :  { %v2335_v63 = vpack.c.bf16 %v2333_v60, %v2331_v59 }
 0x326   :  { %v2336_v0 = vpack.c.bf16 %v2334_v62, %v2332_v61 }
 0x328   :  { %2504 = vmatprep.mubr.bf16.mxu1 %v2336_v0 }
 0x329   :  { %2505 = vmatmul.mubr.bf16.vlgmr.msra.gmra.mrb[8].mxu1 %v2335_v63 }
 0x3fc   :  { %v2862_v4 = vpop.f32.mrb[8].mxu1 }
 0x3fd   :  { %v2863_v24 = vpop.f32.mrb[9].mxu1 }
 0x3fe   :  { %v2864_v1 = vadd.f32 %v2863_v24, %v2862_v4  ;;  %v2865_v2 = vpop.f32.mrb[10].mxu1 }
 0x3ff   :  { %v2866_v3 = vpop.f32.mrb[11].mxu1 }
 0x400   :  { %v2507_v6 = vadd.f32 %v2864_v1, %v2829_v22  ;;  %v2867_v7 = vadd.f32 %v2866_v3, %v2865_v2 }
 0x402   :  { %2513 = vst [vmem:[#allocation10] sm:$0xff] %v2507_v6  ;;  %v2510_v8 = vadd.f32 %v2867_v7, %v2829_v22 }
 0x404   :  { %2514 = vst [vmem:[#allocation10 + $0x8] sm:$0xff] %v2510_v8 }
 0x405   :  { %3479 = shalt.err (!%p3476_p8)
}
 0x406   :  { %s3480_s14 = scalar_lea.hbm %s3680_s7, 256 }
 0x407   :  { %p3481_p9 = scmp.ne.s32.totalorder %s3680_s7, %s3480_s14  ;;  %p3484_p10 = scmp.lt.u32.totalorder %s3480_s14, %s3680_s7 }
 0x409   :  { %p3486_p11 = pnand %p3484_p10, %p3481_p9 }
 0x40b   :  { %3489 = shalt.err (!%p3486_p11)
}
 0x40c   :  { %2526 = dma.vmem_to_hbm [thread:$0]  %s2521_s11, 256, %s3680_s7, [#allocation4], %s3505_s0, %s3505_s0, %s3506_s15  }
 0x40d   :  { %3496 = dma.done.wait [#allocation4], 256  }
 0x40e   :  { %3497 = vsyncadd [#allocation4], 4294967040 }
 0x40f   :  { %2530 = vsyncpa [#allocation3], 1 }
 0x410   :  { %2531 = vsyncpa [#allocation6], 1 }
 0x411   :  { %2532 = vsyncpa [#allocation9], 1 }
 0x412   :  { %2533 = vsyncpa [#allocation4], 1 }

</bundles_post_ra>
